<compile_context>
chip_gen: v5e
topology: v5e:2x2
jax: 0.10.0
libtpu: 0.0.40
codegen_flags: <defaults>
</compile_context>

<pallas_src>
import functools

import jax
import jax.numpy as jnp
from jax.experimental import pallas as pl
from jax.experimental.pallas import tpu as pltpu


def _sa_kernel(x_ref, w_ref, cm_ref, o_ref, *, W, K):
    """x_ref/o_ref: (B, C, H*W) VMEM; w_ref: (2*K*K,) SMEM (avg taps pre-scaled
    by 1/C); cm_ref: (K, H*W) VMEM per-dj column-validity masks."""
    pad = (K - 1) // 2
    KK = K * K
    B = x_ref.shape[0]
    HW = x_ref.shape[2]
    plen = pad * W + pad

    # Channel pooling (torch.max / torch.mean over dim=1), lane-dense.
    # Max in the input dtype, mean as an f32-accumulated sum (1/C folded into
    # the avg tap weights) — no full f32 copy of x is materialized.
    max_pool = jnp.max(x_ref[...], axis=1).astype(jnp.float32)       # (B, HW)
    sum_pool = jnp.sum(x_ref[...], axis=1, dtype=jnp.float32)         # (B, HW)

    # Zero-pad along the flat spatial axis.  Tap (di, dj) reads flat index
    # p + (di - pad) * W + (dj - pad); vertically out-of-range taps land in
    # this zero padding, horizontally out-of-range (row-wrapping) taps are
    # killed by the precomputed per-dj column mask.
    max_p = jnp.pad(max_pool, ((0, 0), (plen, plen)))                 # (B, P)
    sum_p = jnp.pad(sum_pool, ((0, 0), (plen, plen)))                 # (B, P)

    acc = jnp.zeros((B, HW), jnp.float32)
    for dj in range(K):                               # col mask depends on dj only
        part = jnp.zeros((B, HW), jnp.float32)
        for di in range(K):
            t = di * K + dj
            d = di * W + dj                           # static slice offset
            # Weight both pools first (scalar*vector FMA on the VPU), then take
            # ONE shifted slice per tap that covers max and avg together.
            comb = w_ref[t] * max_p + w_ref[KK + t] * sum_p           # (B, P)
            part = part + comb[:, d:d + HW]
        acc = acc + cm_ref[dj] * part                 # zero row-wrapping taps

    y = jax.nn.sigmoid(acc)                           # (B, HW), f32 -> EUP

    # Minimal store epilogue: cast y once, multiply in the input dtype,
    # no redundant outer astype (o_ref.dtype == x.dtype).  NOTE: for bf16
    # inputs this multiplies in bf16 (tiny, documented deviation from an
    # all-f32 reference); exact for f32 inputs.
    o_ref[...] = x_ref[...] * y.astype(o_ref.dtype)[:, None, :]


def _vmem_capacity_bytes():
    """Physical VMEM of the attached TPU, with a conservative fallback."""
    try:
        cap = getattr(pltpu.get_tpu_info(), "vmem_capacity_bytes", None)
        if cap:
            return int(cap)
    except Exception:
        pass
    return 64 << 20  # smallest current generation (v7x)


def _choose_batch_block(n, per_item_bytes, target_bytes=4 << 20):
    """Largest divisor of n whose block stays ~<= target_bytes, preferring a
    grid of at least 2 steps when n >= 2 (both v7x TensorCores get work)."""
    fit = max(1, target_bytes // max(per_item_bytes, 1))
    cap = min(fit, n if n < 2 else max(1, n // 2))
    best = 1
    for d in range(1, n + 1):
        if n % d == 0 and d <= cap:
            best = d
    return best


def salayer_pallas(x, conv_w):
    """x: (N, C, H, W), conv_w: (1, 2, K, K) -> (N, C, H, W)."""
    N, C, H, W = x.shape
    K = conv_w.shape[-1]
    pad = (K - 1) // 2
    HW = H * W

    # Lane-dense layout for the heavy arrays (wrapper reshapes are free).
    x_flat = x.reshape(N, C, HW)

    # SMEM conv weights: [max taps..., avg taps...]; fold torch.mean's 1/C
    # into the avg taps so the kernel only needs a channel sum.
    w_max = conv_w[0, 0].reshape(-1).astype(jnp.float32)
    w_avg = conv_w[0, 1].reshape(-1).astype(jnp.float32) / jnp.float32(C)
    w_flat = jnp.concatenate([w_max, w_avg])                          # (2*K*K,)

    # Per-dj column-validity mask in flat layout: 1.0 where the tap's column
    # index stays inside [0, W), else 0.0 (kills row-wrapping taps).
    w_idx = jnp.arange(HW, dtype=jnp.int32) % W                       # (HW,)
    shift = jnp.arange(K, dtype=jnp.int32) - pad                      # (K,)
    col = w_idx[None, :] + shift[:, None]
    colmask = ((col >= 0) & (col < W)).astype(jnp.float32)            # (K, HW)

    # Batch several images per grid step so each DMA block is ~MiB-sized.
    per_item = C * HW * x.dtype.itemsize
    B = _choose_batch_block(N, per_item)
    num_blocks = N // B
    block_bytes = B * per_item

    # Generation-aware VMEM budget: in+out double-buffered, conv constants and
    # pooled/padded intermediates, plus slack; capped with headroom below the
    # physical capacity (~96 MiB usable on v5e/v6e, ~48 MiB on v7x).
    plen = pad * W + pad
    aux = 2 * K * HW * 4 + 8 * B * (HW + 2 * plen) * 4
    needed = 6 * block_bytes + aux + (4 << 20)
    cap = _vmem_capacity_bytes()
    usable = cap - max(cap // 4, 8 << 20)
    vmem_limit = int(min(max(needed, 16 << 20), usable))
    # TODO(synk): if a single (C, HW) image exceeds this budget (or N == 1 on
    # v7x), add an HW-tile grid axis with a pad*W halo on the pooled rows so
    # the kernel keeps streaming (and both TensorCores get work for N == 1).

    idx = lambda n: (n, 0, 0)
    if num_blocks >= 8 and block_bytes <= (1 << 20):
        # Long stream of small blocks: deepen the x pipeline to hide DMA issue
        # latency (cheap in VMEM at this block size).
        x_spec = pl.BlockSpec((B, C, HW), idx, pipeline_mode=pl.Buffered(3))
    else:
        x_spec = pl.BlockSpec((B, C, HW), idx)

    out_flat = pl.pallas_call(
        functools.partial(_sa_kernel, W=W, K=K),
        out_shape=jax.ShapeDtypeStruct((N, C, HW), x.dtype),
        grid_spec=pltpu.PrefetchScalarGridSpec(
            num_scalar_prefetch=0,
            grid=(num_blocks,),
            in_specs=[
                x_spec,
                pl.BlockSpec(memory_space=pltpu.MemorySpace.SMEM),
                pl.BlockSpec((K, HW), lambda n: (0, 0)),
            ],
            out_specs=pl.BlockSpec((B, C, HW), idx),
        ),
        compiler_params=pltpu.CompilerParams(
            dimension_semantics=("parallel",),
            vmem_limit_bytes=vmem_limit),
    )(x_flat, w_flat, colmask)
    return out_flat.reshape(N, C, H, W)


def salayer_ref(x, conv_w):
    """Pure-JAX reference matching the PyTorch forward (bias=False)."""
    max_pool = jnp.max(x, axis=1, keepdims=True)
    avg_pool = jnp.mean(x, axis=1, keepdims=True)
    channel_pool = jnp.concatenate([max_pool, avg_pool], axis=1)      # (N,2,H,W)
    pad = (conv_w.shape[-1] - 1) // 2
    y = jax.lax.conv_general_dilated(
        channel_pool, conv_w, window_strides=(1, 1),
        padding=((pad, pad), (pad, pad)),
        dimension_numbers=("NCHW", "OIHW", "NCHW"))
    y = jax.nn.sigmoid(y)                                             # (N,1,H,W)
    return x * y


if __name__ == "__main__":
    key = jax.random.PRNGKey(0)
    kx, kw = jax.random.split(key)

    N, C, H, W = 2, 4, 16, 16
    kernel_size = 5

    x = jax.random.normal(kx, (N, C, H, W), dtype=jnp.float32)
    # Deterministic conv weight, shape (out=1, in=2, K, K), bias=False.
    fan_in = 2 * kernel_size * kernel_size
    conv_w = jax.random.uniform(
        kw, (1, 2, kernel_size, kernel_size),
        minval=-1.0, maxval=1.0, dtype=jnp.float32) / jnp.sqrt(float(fan_in))

    out = jax.block_until_ready(salayer_pallas(x, conv_w))
    ref = salayer_ref(x, conv_w)

    assert out.shape == x.shape and out.dtype == x.dtype
    assert jnp.max(jnp.abs(out - ref)) < 2e-5

    print("KERNEL_OK")
</pallas_src>

<mosaic_0001>
module attributes {stable_mosaic.version = 11 : i64} {
  func.func @_sa_kernel(%arg0: i32, %arg1: memref<1x4x256xf32, #tpu.memory_space<vmem>>, %arg2: memref<50xf32, #tpu.memory_space<smem>>, %arg3: memref<5x256xf32, #tpu.memory_space<vmem>>, %arg4: memref<1x4x256xf32, #tpu.memory_space<vmem>>) attributes {dimension_semantics = [#tpu.dimension_semantics<parallel>], iteration_bounds = array<i64: 2>, scalar_prefetch = 0 : i64, scratch_operands = 0 : i64, tpu.core_type = #tpu.core_type<tc>, window_params = [{transform_indices = @transform_0, window_bounds = array<i64: 1, 4, 256>}, {transform_indices = @transform_1, window_bounds = array<i64: 50>}, {pipeline_mode = #tpu.pipeline_mode<synchronous>, transform_indices = @transform_2, window_bounds = array<i64: 5, 256>}, {transform_indices = @transform_3, window_bounds = array<i64: 1, 4, 256>}]} {
    %c0 = arith.constant 0 : index
    %c0_0 = arith.constant 0 : index
    %c0_1 = arith.constant 0 : index
    %0 = vector.load %arg1[%c0, %c0_0, %c0_1] : memref<1x4x256xf32, #tpu.memory_space<vmem>>, vector<1x4x256xf32>
    %cst = arith.constant dense<0xFF800000> : vector<1x256xf32>
    %1 = vector.multi_reduction <maximumf>, %0, %cst [1] : vector<1x4x256xf32> to vector<1x256xf32>
    %c0_2 = arith.constant 0 : index
    %c0_3 = arith.constant 0 : index
    %c0_4 = arith.constant 0 : index
    %2 = vector.load %arg1[%c0_2, %c0_3, %c0_4] : memref<1x4x256xf32, #tpu.memory_space<vmem>>, vector<1x4x256xf32>
    %cst_5 = arith.constant dense<0.000000e+00> : vector<1x256xf32>
    %3 = vector.multi_reduction <add>, %2, %cst_5 [1] : vector<1x4x256xf32> to vector<1x256xf32>
    %c0_i32 = arith.constant 0 : i32
    %4 = arith.sitofp %c0_i32 : i32 to f32
    %5 = vector.broadcast %4 : f32 to vector<1x34xf32>
    %6 = tpu.concatenate %5, %1 in 1 : vector<1x34xf32>, vector<1x256xf32> -> vector<1x290xf32>
    %7 = vector.broadcast %4 : f32 to vector<1x34xf32>
    %8 = tpu.concatenate %6, %7 in 1 : vector<1x290xf32>, vector<1x34xf32> -> vector<1x324xf32>
    %c0_i32_6 = arith.constant 0 : i32
    %9 = arith.sitofp %c0_i32_6 : i32 to f32
    %10 = vector.broadcast %9 : f32 to vector<1x34xf32>
    %11 = tpu.concatenate %10, %3 in 1 : vector<1x34xf32>, vector<1x256xf32> -> vector<1x290xf32>
    %12 = vector.broadcast %9 : f32 to vector<1x34xf32>
    %13 = tpu.concatenate %11, %12 in 1 : vector<1x290xf32>, vector<1x34xf32> -> vector<1x324xf32>
    %cst_7 = arith.constant 0.000000e+00 : f32
    %14 = vector.broadcast %cst_7 : f32 to vector<1x256xf32>
    %cst_8 = arith.constant 0.000000e+00 : f32
    %15 = vector.broadcast %cst_8 : f32 to vector<1x256xf32>
    %c0_9 = arith.constant 0 : index
    %16 = memref.load %arg2[%c0_9] : memref<50xf32, #tpu.memory_space<smem>>
    %17 = vector.broadcast %16 : f32 to vector<1x324xf32>
    %18 = arith.mulf %17, %8 : vector<1x324xf32>
    %c25 = arith.constant 25 : index
    %19 = memref.load %arg2[%c25] : memref<50xf32, #tpu.memory_space<smem>>
    %20 = vector.broadcast %19 : f32 to vector<1x324xf32>
    %21 = arith.mulf %20, %13 : vector<1x324xf32>
    %22 = arith.addf %18, %21 : vector<1x324xf32>
    %23 = vector.extract_strided_slice %22 {offsets = [0, 0], sizes = [1, 256], strides = [1, 1]} : vector<1x324xf32> to vector<1x256xf32>
    %24 = arith.addf %15, %23 : vector<1x256xf32>
    %c5 = arith.constant 5 : index
    %25 = memref.load %arg2[%c5] : memref<50xf32, #tpu.memory_space<smem>>
    %26 = vector.broadcast %25 : f32 to vector<1x324xf32>
    %27 = arith.mulf %26, %8 : vector<1x324xf32>
    %c30 = arith.constant 30 : index
    %28 = memref.load %arg2[%c30] : memref<50xf32, #tpu.memory_space<smem>>
    %29 = vector.broadcast %28 : f32 to vector<1x324xf32>
    %30 = arith.mulf %29, %13 : vector<1x324xf32>
    %31 = arith.addf %27, %30 : vector<1x324xf32>
    %32 = vector.extract_strided_slice %31 {offsets = [0, 16], sizes = [1, 256], strides = [1, 1]} : vector<1x324xf32> to vector<1x256xf32>
    %33 = arith.addf %24, %32 : vector<1x256xf32>
    %c10 = arith.constant 10 : index
    %34 = memref.load %arg2[%c10] : memref<50xf32, #tpu.memory_space<smem>>
    %35 = vector.broadcast %34 : f32 to vector<1x324xf32>
    %36 = arith.mulf %35, %8 : vector<1x324xf32>
    %c35 = arith.constant 35 : index
    %37 = memref.load %arg2[%c35] : memref<50xf32, #tpu.memory_space<smem>>
    %38 = vector.broadcast %37 : f32 to vector<1x324xf32>
    %39 = arith.mulf %38, %13 : vector<1x324xf32>
    %40 = arith.addf %36, %39 : vector<1x324xf32>
    %41 = vector.extract_strided_slice %40 {offsets = [0, 32], sizes = [1, 256], strides = [1, 1]} : vector<1x324xf32> to vector<1x256xf32>
    %42 = arith.addf %33, %41 : vector<1x256xf32>
    %c15 = arith.constant 15 : index
    %43 = memref.load %arg2[%c15] : memref<50xf32, #tpu.memory_space<smem>>
    %44 = vector.broadcast %43 : f32 to vector<1x324xf32>
    %45 = arith.mulf %44, %8 : vector<1x324xf32>
    %c40 = arith.constant 40 : index
    %46 = memref.load %arg2[%c40] : memref<50xf32, #tpu.memory_space<smem>>
    %47 = vector.broadcast %46 : f32 to vector<1x324xf32>
    %48 = arith.mulf %47, %13 : vector<1x324xf32>
    %49 = arith.addf %45, %48 : vector<1x324xf32>
    %50 = vector.extract_strided_slice %49 {offsets = [0, 48], sizes = [1, 256], strides = [1, 1]} : vector<1x324xf32> to vector<1x256xf32>
    %51 = arith.addf %42, %50 : vector<1x256xf32>
    %c20 = arith.constant 20 : index
    %52 = memref.load %arg2[%c20] : memref<50xf32, #tpu.memory_space<smem>>
    %53 = vector.broadcast %52 : f32 to vector<1x324xf32>
    %54 = arith.mulf %53, %8 : vector<1x324xf32>
    %c45 = arith.constant 45 : index
    %55 = memref.load %arg2[%c45] : memref<50xf32, #tpu.memory_space<smem>>
    %56 = vector.broadcast %55 : f32 to vector<1x324xf32>
    %57 = arith.mulf %56, %13 : vector<1x324xf32>
    %58 = arith.addf %54, %57 : vector<1x324xf32>
    %59 = vector.extract_strided_slice %58 {offsets = [0, 64], sizes = [1, 256], strides = [1, 1]} : vector<1x324xf32> to vector<1x256xf32>
    %60 = arith.addf %51, %59 : vector<1x256xf32>
    %c0_10 = arith.constant 0 : index
    %c0_11 = arith.constant 0 : index
    %61 = vector.load %arg3[%c0_10, %c0_11] : memref<5x256xf32, #tpu.memory_space<vmem>>, vector<1x256xf32>
    %62 = vector.shape_cast %61 : vector<1x256xf32> to vector<256xf32>
    %63 = vector.shape_cast %62 : vector<256xf32> to vector<1x256xf32>
    %64 = arith.mulf %63, %60 : vector<1x256xf32>
    %65 = arith.addf %14, %64 : vector<1x256xf32>
    %cst_12 = arith.constant 0.000000e+00 : f32
    %66 = vector.broadcast %cst_12 : f32 to vector<1x256xf32>
    %c1 = arith.constant 1 : index
    %67 = memref.load %arg2[%c1] : memref<50xf32, #tpu.memory_space<smem>>
    %68 = vector.broadcast %67 : f32 to vector<1x324xf32>
    %69 = arith.mulf %68, %8 : vector<1x324xf32>
    %c26 = arith.constant 26 : index
    %70 = memref.load %arg2[%c26] : memref<50xf32, #tpu.memory_space<smem>>
    %71 = vector.broadcast %70 : f32 to vector<1x324xf32>
    %72 = arith.mulf %71, %13 : vector<1x324xf32>
    %73 = arith.addf %69, %72 : vector<1x324xf32>
    %74 = vector.extract_strided_slice %73 {offsets = [0, 1], sizes = [1, 256], strides = [1, 1]} : vector<1x324xf32> to vector<1x256xf32>
    %75 = arith.addf %66, %74 : vector<1x256xf32>
    %c6 = arith.constant 6 : index
    %76 = memref.load %arg2[%c6] : memref<50xf32, #tpu.memory_space<smem>>
    %77 = vector.broadcast %76 : f32 to vector<1x324xf32>
    %78 = arith.mulf %77, %8 : vector<1x324xf32>
    %c31 = arith.constant 31 : index
    %79 = memref.load %arg2[%c31] : memref<50xf32, #tpu.memory_space<smem>>
    %80 = vector.broadcast %79 : f32 to vector<1x324xf32>
    %81 = arith.mulf %80, %13 : vector<1x324xf32>
    %82 = arith.addf %78, %81 : vector<1x324xf32>
    %83 = vector.extract_strided_slice %82 {offsets = [0, 17], sizes = [1, 256], strides = [1, 1]} : vector<1x324xf32> to vector<1x256xf32>
    %84 = arith.addf %75, %83 : vector<1x256xf32>
    %c11 = arith.constant 11 : index
    %85 = memref.load %arg2[%c11] : memref<50xf32, #tpu.memory_space<smem>>
    %86 = vector.broadcast %85 : f32 to vector<1x324xf32>
    %87 = arith.mulf %86, %8 : vector<1x324xf32>
    %c36 = arith.constant 36 : index
    %88 = memref.load %arg2[%c36] : memref<50xf32, #tpu.memory_space<smem>>
    %89 = vector.broadcast %88 : f32 to vector<1x324xf32>
    %90 = arith.mulf %89, %13 : vector<1x324xf32>
    %91 = arith.addf %87, %90 : vector<1x324xf32>
    %92 = vector.extract_strided_slice %91 {offsets = [0, 33], sizes = [1, 256], strides = [1, 1]} : vector<1x324xf32> to vector<1x256xf32>
    %93 = arith.addf %84, %92 : vector<1x256xf32>
    %c16 = arith.constant 16 : index
    %94 = memref.load %arg2[%c16] : memref<50xf32, #tpu.memory_space<smem>>
    %95 = vector.broadcast %94 : f32 to vector<1x324xf32>
    %96 = arith.mulf %95, %8 : vector<1x324xf32>
    %c41 = arith.constant 41 : index
    %97 = memref.load %arg2[%c41] : memref<50xf32, #tpu.memory_space<smem>>
    %98 = vector.broadcast %97 : f32 to vector<1x324xf32>
    %99 = arith.mulf %98, %13 : vector<1x324xf32>
    %100 = arith.addf %96, %99 : vector<1x324xf32>
    %101 = vector.extract_strided_slice %100 {offsets = [0, 49], sizes = [1, 256], strides = [1, 1]} : vector<1x324xf32> to vector<1x256xf32>
    %102 = arith.addf %93, %101 : vector<1x256xf32>
    %c21 = arith.constant 21 : index
    %103 = memref.load %arg2[%c21] : memref<50xf32, #tpu.memory_space<smem>>
    %104 = vector.broadcast %103 : f32 to vector<1x324xf32>
    %105 = arith.mulf %104, %8 : vector<1x324xf32>
    %c46 = arith.constant 46 : index
    %106 = memref.load %arg2[%c46] : memref<50xf32, #tpu.memory_space<smem>>
    %107 = vector.broadcast %106 : f32 to vector<1x324xf32>
    %108 = arith.mulf %107, %13 : vector<1x324xf32>
    %109 = arith.addf %105, %108 : vector<1x324xf32>
    %110 = vector.extract_strided_slice %109 {offsets = [0, 65], sizes = [1, 256], strides = [1, 1]} : vector<1x324xf32> to vector<1x256xf32>
    %111 = arith.addf %102, %110 : vector<1x256xf32>
    %c1_13 = arith.constant 1 : index
    %c0_14 = arith.constant 0 : index
    %112 = vector.load %arg3[%c1_13, %c0_14] : memref<5x256xf32, #tpu.memory_space<vmem>>, vector<1x256xf32>
    %113 = vector.shape_cast %112 : vector<1x256xf32> to vector<256xf32>
    %114 = vector.shape_cast %113 : vector<256xf32> to vector<1x256xf32>
    %115 = arith.mulf %114, %111 : vector<1x256xf32>
    %116 = arith.addf %65, %115 : vector<1x256xf32>
    %cst_15 = arith.constant 0.000000e+00 : f32
    %117 = vector.broadcast %cst_15 : f32 to vector<1x256xf32>
    %c2 = arith.constant 2 : index
    %118 = memref.load %arg2[%c2] : memref<50xf32, #tpu.memory_space<smem>>
    %119 = vector.broadcast %118 : f32 to vector<1x324xf32>
    %120 = arith.mulf %119, %8 : vector<1x324xf32>
    %c27 = arith.constant 27 : index
    %121 = memref.load %arg2[%c27] : memref<50xf32, #tpu.memory_space<smem>>
    %122 = vector.broadcast %121 : f32 to vector<1x324xf32>
    %123 = arith.mulf %122, %13 : vector<1x324xf32>
    %124 = arith.addf %120, %123 : vector<1x324xf32>
    %125 = vector.extract_strided_slice %124 {offsets = [0, 2], sizes = [1, 256], strides = [1, 1]} : vector<1x324xf32> to vector<1x256xf32>
    %126 = arith.addf %117, %125 : vector<1x256xf32>
    %c7 = arith.constant 7 : index
    %127 = memref.load %arg2[%c7] : memref<50xf32, #tpu.memory_space<smem>>
    %128 = vector.broadcast %127 : f32 to vector<1x324xf32>
    %129 = arith.mulf %128, %8 : vector<1x324xf32>
    %c32 = arith.constant 32 : index
    %130 = memref.load %arg2[%c32] : memref<50xf32, #tpu.memory_space<smem>>
    %131 = vector.broadcast %130 : f32 to vector<1x324xf32>
    %132 = arith.mulf %131, %13 : vector<1x324xf32>
    %133 = arith.addf %129, %132 : vector<1x324xf32>
    %134 = vector.extract_strided_slice %133 {offsets = [0, 18], sizes = [1, 256], strides = [1, 1]} : vector<1x324xf32> to vector<1x256xf32>
    %135 = arith.addf %126, %134 : vector<1x256xf32>
    %c12 = arith.constant 12 : index
    %136 = memref.load %arg2[%c12] : memref<50xf32, #tpu.memory_space<smem>>
    %137 = vector.broadcast %136 : f32 to vector<1x324xf32>
    %138 = arith.mulf %137, %8 : vector<1x324xf32>
    %c37 = arith.constant 37 : index
    %139 = memref.load %arg2[%c37] : memref<50xf32, #tpu.memory_space<smem>>
    %140 = vector.broadcast %139 : f32 to vector<1x324xf32>
    %141 = arith.mulf %140, %13 : vector<1x324xf32>
    %142 = arith.addf %138, %141 : vector<1x324xf32>
    %143 = vector.extract_strided_slice %142 {offsets = [0, 34], sizes = [1, 256], strides = [1, 1]} : vector<1x324xf32> to vector<1x256xf32>
    %144 = arith.addf %135, %143 : vector<1x256xf32>
    %c17 = arith.constant 17 : index
    %145 = memref.load %arg2[%c17] : memref<50xf32, #tpu.memory_space<smem>>
    %146 = vector.broadcast %145 : f32 to vector<1x324xf32>
    %147 = arith.mulf %146, %8 : vector<1x324xf32>
    %c42 = arith.constant 42 : index
    %148 = memref.load %arg2[%c42] : memref<50xf32, #tpu.memory_space<smem>>
    %149 = vector.broadcast %148 : f32 to vector<1x324xf32>
    %150 = arith.mulf %149, %13 : vector<1x324xf32>
    %151 = arith.addf %147, %150 : vector<1x324xf32>
    %152 = vector.extract_strided_slice %151 {offsets = [0, 50], sizes = [1, 256], strides = [1, 1]} : vector<1x324xf32> to vector<1x256xf32>
    %153 = arith.addf %144, %152 : vector<1x256xf32>
    %c22 = arith.constant 22 : index
    %154 = memref.load %arg2[%c22] : memref<50xf32, #tpu.memory_space<smem>>
    %155 = vector.broadcast %154 : f32 to vector<1x324xf32>
    %156 = arith.mulf %155, %8 : vector<1x324xf32>
    %c47 = arith.constant 47 : index
    %157 = memref.load %arg2[%c47] : memref<50xf32, #tpu.memory_space<smem>>
    %158 = vector.broadcast %157 : f32 to vector<1x324xf32>
    %159 = arith.mulf %158, %13 : vector<1x324xf32>
    %160 = arith.addf %156, %159 : vector<1x324xf32>
    %161 = vector.extract_strided_slice %160 {offsets = [0, 66], sizes = [1, 256], strides = [1, 1]} : vector<1x324xf32> to vector<1x256xf32>
    %162 = arith.addf %153, %161 : vector<1x256xf32>
    %c2_16 = arith.constant 2 : index
    %c0_17 = arith.constant 0 : index
    %163 = vector.load %arg3[%c2_16, %c0_17] : memref<5x256xf32, #tpu.memory_space<vmem>>, vector<1x256xf32>
    %164 = vector.shape_cast %163 : vector<1x256xf32> to vector<256xf32>
    %165 = vector.shape_cast %164 : vector<256xf32> to vector<1x256xf32>
    %166 = arith.mulf %165, %162 : vector<1x256xf32>
    %167 = arith.addf %116, %166 : vector<1x256xf32>
    %cst_18 = arith.constant 0.000000e+00 : f32
    %168 = vector.broadcast %cst_18 : f32 to vector<1x256xf32>
    %c3 = arith.constant 3 : index
    %169 = memref.load %arg2[%c3] : memref<50xf32, #tpu.memory_space<smem>>
    %170 = vector.broadcast %169 : f32 to vector<1x324xf32>
    %171 = arith.mulf %170, %8 : vector<1x324xf32>
    %c28 = arith.constant 28 : index
    %172 = memref.load %arg2[%c28] : memref<50xf32, #tpu.memory_space<smem>>
    %173 = vector.broadcast %172 : f32 to vector<1x324xf32>
    %174 = arith.mulf %173, %13 : vector<1x324xf32>
    %175 = arith.addf %171, %174 : vector<1x324xf32>
    %176 = vector.extract_strided_slice %175 {offsets = [0, 3], sizes = [1, 256], strides = [1, 1]} : vector<1x324xf32> to vector<1x256xf32>
    %177 = arith.addf %168, %176 : vector<1x256xf32>
    %c8 = arith.constant 8 : index
    %178 = memref.load %arg2[%c8] : memref<50xf32, #tpu.memory_space<smem>>
    %179 = vector.broadcast %178 : f32 to vector<1x324xf32>
    %180 = arith.mulf %179, %8 : vector<1x324xf32>
    %c33 = arith.constant 33 : index
    %181 = memref.load %arg2[%c33] : memref<50xf32, #tpu.memory_space<smem>>
    %182 = vector.broadcast %181 : f32 to vector<1x324xf32>
    %183 = arith.mulf %182, %13 : vector<1x324xf32>
    %184 = arith.addf %180, %183 : vector<1x324xf32>
    %185 = vector.extract_strided_slice %184 {offsets = [0, 19], sizes = [1, 256], strides = [1, 1]} : vector<1x324xf32> to vector<1x256xf32>
    %186 = arith.addf %177, %185 : vector<1x256xf32>
    %c13 = arith.constant 13 : index
    %187 = memref.load %arg2[%c13] : memref<50xf32, #tpu.memory_space<smem>>
    %188 = vector.broadcast %187 : f32 to vector<1x324xf32>
    %189 = arith.mulf %188, %8 : vector<1x324xf32>
    %c38 = arith.constant 38 : index
    %190 = memref.load %arg2[%c38] : memref<50xf32, #tpu.memory_space<smem>>
    %191 = vector.broadcast %190 : f32 to vector<1x324xf32>
    %192 = arith.mulf %191, %13 : vector<1x324xf32>
    %193 = arith.addf %189, %192 : vector<1x324xf32>
    %194 = vector.extract_strided_slice %193 {offsets = [0, 35], sizes = [1, 256], strides = [1, 1]} : vector<1x324xf32> to vector<1x256xf32>
    %195 = arith.addf %186, %194 : vector<1x256xf32>
    %c18 = arith.constant 18 : index
    %196 = memref.load %arg2[%c18] : memref<50xf32, #tpu.memory_space<smem>>
    %197 = vector.broadcast %196 : f32 to vector<1x324xf32>
    %198 = arith.mulf %197, %8 : vector<1x324xf32>
    %c43 = arith.constant 43 : index
    %199 = memref.load %arg2[%c43] : memref<50xf32, #tpu.memory_space<smem>>
    %200 = vector.broadcast %199 : f32 to vector<1x324xf32>
    %201 = arith.mulf %200, %13 : vector<1x324xf32>
    %202 = arith.addf %198, %201 : vector<1x324xf32>
    %203 = vector.extract_strided_slice %202 {offsets = [0, 51], sizes = [1, 256], strides = [1, 1]} : vector<1x324xf32> to vector<1x256xf32>
    %204 = arith.addf %195, %203 : vector<1x256xf32>
    %c23 = arith.constant 23 : index
    %205 = memref.load %arg2[%c23] : memref<50xf32, #tpu.memory_space<smem>>
    %206 = vector.broadcast %205 : f32 to vector<1x324xf32>
    %207 = arith.mulf %206, %8 : vector<1x324xf32>
    %c48 = arith.constant 48 : index
    %208 = memref.load %arg2[%c48] : memref<50xf32, #tpu.memory_space<smem>>
    %209 = vector.broadcast %208 : f32 to vector<1x324xf32>
    %210 = arith.mulf %209, %13 : vector<1x324xf32>
    %211 = arith.addf %207, %210 : vector<1x324xf32>
    %212 = vector.extract_strided_slice %211 {offsets = [0, 67], sizes = [1, 256], strides = [1, 1]} : vector<1x324xf32> to vector<1x256xf32>
    %213 = arith.addf %204, %212 : vector<1x256xf32>
    %c3_19 = arith.constant 3 : index
    %c0_20 = arith.constant 0 : index
    %214 = vector.load %arg3[%c3_19, %c0_20] : memref<5x256xf32, #tpu.memory_space<vmem>>, vector<1x256xf32>
    %215 = vector.shape_cast %214 : vector<1x256xf32> to vector<256xf32>
    %216 = vector.shape_cast %215 : vector<256xf32> to vector<1x256xf32>
    %217 = arith.mulf %216, %213 : vector<1x256xf32>
    %218 = arith.addf %167, %217 : vector<1x256xf32>
    %cst_21 = arith.constant 0.000000e+00 : f32
    %219 = vector.broadcast %cst_21 : f32 to vector<1x256xf32>
    %c4 = arith.constant 4 : index
    %220 = memref.load %arg2[%c4] : memref<50xf32, #tpu.memory_space<smem>>
    %221 = vector.broadcast %220 : f32 to vector<1x324xf32>
    %222 = arith.mulf %221, %8 : vector<1x324xf32>
    %c29 = arith.constant 29 : index
    %223 = memref.load %arg2[%c29] : memref<50xf32, #tpu.memory_space<smem>>
    %224 = vector.broadcast %223 : f32 to vector<1x324xf32>
    %225 = arith.mulf %224, %13 : vector<1x324xf32>
    %226 = arith.addf %222, %225 : vector<1x324xf32>
    %227 = vector.extract_strided_slice %226 {offsets = [0, 4], sizes = [1, 256], strides = [1, 1]} : vector<1x324xf32> to vector<1x256xf32>
    %228 = arith.addf %219, %227 : vector<1x256xf32>
    %c9 = arith.constant 9 : index
    %229 = memref.load %arg2[%c9] : memref<50xf32, #tpu.memory_space<smem>>
    %230 = vector.broadcast %229 : f32 to vector<1x324xf32>
    %231 = arith.mulf %230, %8 : vector<1x324xf32>
    %c34 = arith.constant 34 : index
    %232 = memref.load %arg2[%c34] : memref<50xf32, #tpu.memory_space<smem>>
    %233 = vector.broadcast %232 : f32 to vector<1x324xf32>
    %234 = arith.mulf %233, %13 : vector<1x324xf32>
    %235 = arith.addf %231, %234 : vector<1x324xf32>
    %236 = vector.extract_strided_slice %235 {offsets = [0, 20], sizes = [1, 256], strides = [1, 1]} : vector<1x324xf32> to vector<1x256xf32>
    %237 = arith.addf %228, %236 : vector<1x256xf32>
    %c14 = arith.constant 14 : index
    %238 = memref.load %arg2[%c14] : memref<50xf32, #tpu.memory_space<smem>>
    %239 = vector.broadcast %238 : f32 to vector<1x324xf32>
    %240 = arith.mulf %239, %8 : vector<1x324xf32>
    %c39 = arith.constant 39 : index
    %241 = memref.load %arg2[%c39] : memref<50xf32, #tpu.memory_space<smem>>
    %242 = vector.broadcast %241 : f32 to vector<1x324xf32>
    %243 = arith.mulf %242, %13 : vector<1x324xf32>
    %244 = arith.addf %240, %243 : vector<1x324xf32>
    %245 = vector.extract_strided_slice %244 {offsets = [0, 36], sizes = [1, 256], strides = [1, 1]} : vector<1x324xf32> to vector<1x256xf32>
    %246 = arith.addf %237, %245 : vector<1x256xf32>
    %c19 = arith.constant 19 : index
    %247 = memref.load %arg2[%c19] : memref<50xf32, #tpu.memory_space<smem>>
    %248 = vector.broadcast %247 : f32 to vector<1x324xf32>
    %249 = arith.mulf %248, %8 : vector<1x324xf32>
    %c44 = arith.constant 44 : index
    %250 = memref.load %arg2[%c44] : memref<50xf32, #tpu.memory_space<smem>>
    %251 = vector.broadcast %250 : f32 to vector<1x324xf32>
    %252 = arith.mulf %251, %13 : vector<1x324xf32>
    %253 = arith.addf %249, %252 : vector<1x324xf32>
    %254 = vector.extract_strided_slice %253 {offsets = [0, 52], sizes = [1, 256], strides = [1, 1]} : vector<1x324xf32> to vector<1x256xf32>
    %255 = arith.addf %246, %254 : vector<1x256xf32>
    %c24 = arith.constant 24 : index
    %256 = memref.load %arg2[%c24] : memref<50xf32, #tpu.memory_space<smem>>
    %257 = vector.broadcast %256 : f32 to vector<1x324xf32>
    %258 = arith.mulf %257, %8 : vector<1x324xf32>
    %c49 = arith.constant 49 : index
    %259 = memref.load %arg2[%c49] : memref<50xf32, #tpu.memory_space<smem>>
    %260 = vector.broadcast %259 : f32 to vector<1x324xf32>
    %261 = arith.mulf %260, %13 : vector<1x324xf32>
    %262 = arith.addf %258, %261 : vector<1x324xf32>
    %263 = vector.extract_strided_slice %262 {offsets = [0, 68], sizes = [1, 256], strides = [1, 1]} : vector<1x324xf32> to vector<1x256xf32>
    %264 = arith.addf %255, %263 : vector<1x256xf32>
    %c4_22 = arith.constant 4 : index
    %c0_23 = arith.constant 0 : index
    %265 = vector.load %arg3[%c4_22, %c0_23] : memref<5x256xf32, #tpu.memory_space<vmem>>, vector<1x256xf32>
    %266 = vector.shape_cast %265 : vector<1x256xf32> to vector<256xf32>
    %267 = vector.shape_cast %266 : vector<256xf32> to vector<1x256xf32>
    %268 = arith.mulf %267, %264 : vector<1x256xf32>
    %269 = arith.addf %218, %268 : vector<1x256xf32>
    %270 = arith.negf %269 : vector<1x256xf32>
    %271 = math.exp %270 : vector<1x256xf32>
    %cst_24 = arith.constant 1.000000e+00 : f32
    %272 = vector.broadcast %cst_24 : f32 to vector<1x256xf32>
    %273 = arith.addf %272, %271 : vector<1x256xf32>
    %274 = arith.divf %272, %273 : vector<1x256xf32>
    %c0_25 = arith.constant 0 : index
    %c0_26 = arith.constant 0 : index
    %c0_27 = arith.constant 0 : index
    %275 = vector.load %arg1[%c0_25, %c0_26, %c0_27] : memref<1x4x256xf32, #tpu.memory_space<vmem>>, vector<1x4x256xf32>
    %276 = vector.shape_cast %274 : vector<1x256xf32> to vector<1x1x256xf32>
    %277 = vector.broadcast %276 : vector<1x1x256xf32> to vector<1x4x256xf32>
    %278 = arith.mulf %275, %277 : vector<1x4x256xf32>
    %c0_28 = arith.constant 0 : index
    %c0_29 = arith.constant 0 : index
    %c0_30 = arith.constant 0 : index
    %279 = vector.load %arg4[%c0_28, %c0_29, %c0_30] : memref<1x4x256xf32, #tpu.memory_space<vmem>>, vector<1x4x256xf32>
    tpu.vector_store %arg4[%c0_28, %c0_29, %c0_30], %278 {strides = array<i32>} : memref<1x4x256xf32, #tpu.memory_space<vmem>>, vector<1x4x256xf32>,
    return
  }
  func.func @transform_0(%arg0: i32) -> (i32, i32, i32) {
    %c0_i32 = arith.constant 0 : i32
    %c0_i32_0 = arith.constant 0 : i32
    %c0_i32_1 = arith.constant 0 : i32
    return %arg0, %c0_i32, %c0_i32_0 : i32, i32, i32
  }
  func.func @transform_1(%arg0: i32) -> i32 {
    %c0_i32 = arith.constant 0 : i32
    %c0_i32_0 = arith.constant 0 : i32
    return %c0_i32 : i32
  }
  func.func @transform_2(%arg0: i32) -> (i32, i32) {
    %c0_i32 = arith.constant 0 : i32
    %c0_i32_0 = arith.constant 0 : i32
    %c0_i32_1 = arith.constant 0 : i32
    return %c0_i32, %c0_i32_0 : i32, i32
  }
  func.func @transform_3(%arg0: i32) -> (i32, i32, i32) {
    %c0_i32 = arith.constant 0 : i32
    %c0_i32_0 = arith.constant 0 : i32
    %c0_i32_1 = arith.constant 0 : i32
    return %arg0, %c0_i32, %c0_i32_0 : i32, i32, i32
  }
}

</mosaic_0001>

<bundles_post_ra>
// kernel: tpu_custom_call.1
= control target key start
LH: loop header
LB: loop body
LE: loop exit
PB: predicated region body
PF: predicated region fallthrough
CT: control target
= control target key end

     0   :  { %s2526_s0 = inlined_call_operand.hbm [shape: f32[2,4,256], index: 0, kind: input, shape index: {}]   ;;  %s2527_s1 = inlined_call_operand.hbm [shape: f32[50], index: 1, kind: input, shape index: {}]   ;;  %s2528_s2 = inlined_call_operand.hbm [shape: f32[5,256], index: 2, kind: input, shape index: {}]   ;;  %s2529_s3 = inlined_call_operand.hbm [shape: f32[2,4,256], index: 3, kind: output, shape index: {}]  }
   0x1   :  { %2550 = sst [smem:[#allocation37_spill]] %s2526_s0 }
   0x2   :  { %2551 = sst [smem:[#allocation38_spill]] %s2527_s1 }
   0x3   :  { %2552 = sst [smem:[#allocation39_spill]] %s2528_s2 }
   0x4   :  { %2553 = sst [smem:[#allocation40_spill]] %s2529_s3 }
   0x5   :  { %8 = vsyncpa [#allocation3], 0 }
   0x6   :  { %10 = vsyncpa [#allocation3 + $0x1], 0 }
   0x7   :  { %11 = vsyncpa [#allocation5], 0 }
   0x8   :  { %12 = vsyncpa [#allocation8], 0 }
   0x9   :  { %13 = vsyncpa [#allocation4], 0 }
   0xa   :  { %15 = vsyncpa [#allocation4 + $0x1], 0  ;;  %s1502_s12 = smov 0   ;;  %s1504_s13 = smov 0  }
   0xb   :  { %s1506_s14 = smov 0   ;;  %s1508_s15 = smov 0  }
   0xc LB: > { %2554 = sst [smem:[#allocation14_spill]] %s1457_s12  ;;  %s1523_s16 = sadd.s32 4294967295, %s1469_s15   ;;  %s1469_s15 = sphi %s1508_s15, %s2620_s15   ;;  %s1465_s14 = sphi %s1506_s14, %s2623_s14   ;;  %s1461_s13 = sphi %s1504_s13, %s2622_s13   ;;  %s1457_s12 = sphi %s1502_s12, %s2621_s12  }
   0xd   : > { %2555 = sst [smem:[#allocation15_spill]] %s1461_s13  ;;  %s1170_s17 = sadd.s32 4294967294, %s1469_s15  }
   0xe   : > { %2556 = sst [smem:[#allocation16_spill]] %s1465_s14  ;;  %p41_p0 = scmp.ne.s32.totalorder %s1461_s13, %s1457_s12 }
   0xf   : > { %2557 = sst [smem:[#allocation17_spill]] %s1469_s15  ;;  %p42_p1 = scmp.eq.s32.totalorder %s1523_s16, 0 }
  0x10   : > { %p107_p2 = scmp.eq.s32.totalorder %s1523_s16, 1  ;;  %p113_p3 = scmp.eq.s32.totalorder %s1170_s17, 1 }
  0x11   : > { %p1532_p4 = por %p42_p1, %p41_p0  ;;  %p1171_p5 = scmp.ge.s32.totalorder %s1469_s15, 1 }
  0x12   : > { %p1537_p6 = por %p113_p3, %p41_p0  ;;  %p120_p7 = scmp.lt.s32.totalorder %s1469_s15, 3 }
  0x13   : > { %s2561_s1 = sld [smem:[#allocation38_spill]]  ;;  %s1471_s27 = smov [#allocation7]  }
  0x14   : > { %s2559_s19 = scalar_select %p1537_p6, 1, 0 }
  0x15   : > { %p1545_p8 = pnand %p1171_p5, %p120_p7  ;;  %s2563_s2 = sld [smem:[#allocation39_spill]] }
  0x16   : > { %2560 = sst [smem:[#allocation18_spill]] %s2559_s19  ;;  %s144_s28 = sshll.u32 %s1471_s27, 4  ;;  %s145_s28 = int_to_ptr.vmem [resolvable:$true] %s144_s28 }
  0x17   : > { %p1252_p10 = pneg %p1545_p8  ;;  %s1472_s29 = smov [#allocation6]  }
  0x18   : > { %s1558_s30 = sadd.s32 1, %s1469_s15   ;;  %s28_s4 = sadd.s32 1, %s1465_s14 }
  0x19   : > { %s132_s22 = sshll.u32 %s2561_s1, 4  ;;  %p1253_p11 = pnand %p1252_p10, %p42_p1  ;;  %s133_s22 = int_to_ptr.hbm [resolvable:$true] %s132_s22 }
  0x1a   : > { %2564 = sst [smem:[#allocation19_spill]] %s1558_s30  ;;  %s25_s5 = ssub.s32 %s1469_s15, %s1558_s30 }
  0x1b   : > { %s142_s26 = sshll.u32 %s2563_s2, 4  ;;  %p35_p12 = scmp.ne.s32.totalorder %s1465_s14, %s1461_s13  ;;  %s143_s26 = int_to_ptr.hbm [resolvable:$true] %s142_s26 }
  0x1c   : > { %1255 = dma.hbm_to_smem (!%p1253_p11), %s133_s22, 16, %s1472_s29, [#allocation5]  }
  0x1d   : > { %1258 = dma.hbm_to_vmem [thread:$0]  (!%p1253_p11), %s143_s26, 256, %s145_s28, [#allocation8]  }
  0x1e   : > { %p26_p13 = scmp.eq.s32.totalorder %s25_s5, 0  ;;  %p36_p0 = scmp.eq.s32.totalorder %s1469_s15, 0 }
  0x1f   : > { %p1568_p3 = por %p107_p2, %p35_p12  ;;  %p1269_p5 = scmp.lt.s32.totalorder %s1469_s15, 2 }
  0x20   : > { %s1574_s7 = scalar_select %p26_p13, %s1465_s14, %s28_s4  }
  0x21   : > { %s2565_s6 = scalar_select %p1568_p3, 1, 0 }
  0x22   : > { %2567 = sst [smem:[#allocation21_spill]] %s1574_s7  ;;  %p37_p7 = por %p36_p0, %p35_p12 }
  0x23   : > { %2566 = sst [smem:[#allocation20_spill]] %s2565_s6  ;;  %s155_s8 = sand.u32 1, %s1465_s14  }
  0x24   : > { %s1175_s9 = sshll.u32 %s155_s8, 3  ;;  %s1238_s10 = sshll.u32 %s1469_s15, 3 }
  0x25   : > { %s2568_s0 = sld [smem:[#allocation37_spill]]  ;;  %s159_s21 = scalar_lea.vmem [#allocation2], %s1175_s9 }
  0x26   : > { %s168_s22 = sshll.u32 %s159_s21, 4  ;;  %p1581_p2 = pnand %p1269_p5, %p37_p7  ;;  %s169_s22 = int_to_ptr.vmem [resolvable:$true] %s168_s22 }
  0x27   : > { %s156_s26 = scalar_lea.sflag [#allocation3], %s155_s8 }
  0x28   : > { %p1369_p11 = pneg %p1581_p2 }
  0x2b   : > { %s164_s20 = scalar_lea.hbm %s2568_s0, %s1238_s10  ;;  %s1372_s5 = scalar_lea.hbm %s2568_s0, 16 }
  0x2c   : > { %s166_s24 = sshll.u32 %s164_s20, 4  ;;  %s167_s24 = int_to_ptr.hbm [resolvable:$true] %s166_s24 }
  0x2d   : > { %s1365_s27 = sshra.s32 %s167_s24, 4  ;;  %s1366_s27 = int_to_ptr.hbm [resolvable:$true] %s1365_s27 }
  0x2e   : > { %s1367_s28 = scalar_lea.hbm %s1366_s27, 8  ;;  %p1373_p0 = scmp.lt.s32.totalorder %s1366_s27, %s2568_s0 }
  0x2f   : > { %p1368_p10 = scmp.ne.s32.totalorder %s1366_s27, %s1367_s28  ;;  %p1374_p5 = scmp.lt.s32.totalorder %s1372_s5, %s1367_s28 }
  0x31   : > { %p1370_p12 = pnand %p1369_p11, %p1368_p10  ;;  %p1375_p7 = por %p1374_p5, %p1373_p0 }
  0x33   : > { %p1371_p13 = pneg %p1370_p12 }
  0x35   : > { %p1376_p9 = pnand %p1375_p7, %p1371_p13 }
  0x37   : > { %1379 = shalt.err (!%p1376_p9)
}
  0x38   : > { %1262 = dma.hbm_to_vmem [thread:$0]  (!%p1581_p2), %s167_s24, 128, %s169_s22, %s156_s26  }
  0x39   : > { %177 = sbr.rel (%p1545_p8) target bundleno = 663 (0x297), region = 32 }
  0x3e   : > { %s1598_s8 = sand.u32 1, %s1461_s13  }
  0x3f   : > { %s2530_s11 = sshll.u32 %s1598_s8, 3  ;;  %s180_s17 = scalar_lea.sflag [#allocation3], %s1598_s8 }
  0x40   : > { %s183_s20 = scalar_lea.vmem [#allocation2], %s2530_s11 }
  0x41   : > { %1440 = dma.done.wait (%p1532_p4), %s180_s17, 128  }
  0x42   : > { %1442 = vsyncadd (%p1532_p4), %s180_s17, 4294967168 }
  0x43   : > { %1444 = dma.done.wait (%p42_p1), [#allocation5], 16  }
  0x44   : > { %1446 = vsyncadd (%p42_p1), [#allocation5], 4294967280 }
  0x45   : > { %1448 = dma.done.wait (%p42_p1), [#allocation8], 256  }
  0x46   : > { %1450 = vsyncadd (%p42_p1), [#allocation8], 4294967040 }
  0x47   : > { %199 = sfence }
  0x48   : > { %v1616_v0 = vld [vmem:[%s183_s20] sm:$0xff]  ;;  %vm225_vm0 = vcmask 1043456   ;;  %s1473_s18 = smov 34   ;;  %s1186_s23 = sld [smem:[#allocation6 + $0xa]]  ;;  %vm265_vm1 = vcmask 277504   ;;  %vm318_vm2 = vcmask 916480  }
  0x49   : > { %2570 = vst [vmem:[#allocation22_spill] sm:$0xff] %v1616_v0  ;;  %s1187_s21 = sld [smem:[#allocation6 + $0x23]]  ;;  %vm347_vm3 = vcmask 785408   ;;  %vm376_vm4 = vcmask 654336   ;;  %vm405_vm5 = vcmask 523264   ;;  %vm416_vm6 = vcmask 1040384  }
  0x4a   : > { %220 = vst [vmem:[#allocation1] ss:$2 sm:$0xff] %v1616_v0  ;;  %s1184_s22 = sld [smem:[#allocation6 + $0x5]]  ;;  %vm565_vm7 = vcmask 1041408   ;;  %vm570_vm8 = vcmask 1039360   ;;  %vm723_vm9 = vcmask 1031168  }
  0x4b   : > { %s1185_s24 = sld [smem:[#allocation6 + $0x1e]]  ;;  %vm876_vm10 = vcmask 1022976   ;;  %vm1029_vm11 = vcmask 1014784  }
  0x4c   : > { %s1188_s25 = sld [smem:[#allocation6 + $0xf]] }
  0x4d   : > { %s1624_s26 = sld [smem:[#allocation6 + $0x28]] }
  0x4e   : > { %s1626_s27 = sld [smem:[#allocation6 + $0x14]]  ;;  %v1670_v33 = vstv %s1186_s23 }
  0x4f   : > { %s1628_s28 = sld [smem:[#allocation6 + $0x2d]]  ;;  %v1674_v34 = vstv %s1187_s21 }
  0x50   : > { %s1630_s29 = sld [smem:[#allocation6 + $0x6]]  ;;  %v1676_v35 = vstv %s1184_s22 }
  0x51   : > { %v221_v1 = vld.sshfl [vmem:[#allocation1] sm:$0xff pattern:$0x75316420]  ;;  %v222_v2 = vld.sshfl [vmem:[#allocation1 + $0x8] sm:$0xff pattern:$0x75316420]  ;;  %v1678_v36 = vstv %s1185_s24 }
  0x52   : > { %v226_v3 = vsel %vm225_vm0, %v221_v1, -inf  ;;  %240 = vst [vmem:[#allocation1] ss:$2 sm:$0xff] %v1616_v0  ;;  %v233_v4 = vsel %vm225_vm0, %v222_v2, -inf  ;;  %s1632_s4 = sld [smem:[#allocation6 + $0x1f]]  ;;  %v1680_v37 = vstv %s1188_s25 }
  0x53   : > { %v227_v5 = vrot.slane %v226_v3, 4  ;;  %v234_v6 = vrot.slane %v233_v4, 4  ;;  %s1634_s5 = sld [smem:[#allocation6 + $0xb]]  ;;  %v1683_v39 = vstv %s1624_s26 }
  0x54   : > { %s1636_s9 = sld [smem:[#allocation6 + $0x24]]  ;;  %v1686_v40 = vstv %s1626_s27 }
  0x55   : > { %v228_v7 = vmax.f32 %v226_v3, %v227_v5  ;;  %v235_v8 = vmax.f32 %v233_v4, %v234_v6  ;;  %s1638_s10 = sld [smem:[#allocation6 + $0x7]]  ;;  %v1689_v41 = vstv %s1628_s28 }
  0x56   : > { %s1640_s17 = sld [smem:[#allocation6 + $0x20]]  ;;  %v1692_v42 = vstv %s1630_s29 }
  0x57   : > { %v229_v9 = vrot.slane %v228_v7, 2  ;;  %v236_v10 = vrot.slane %v235_v8, 2  ;;  %s1642_s20 = sld [smem:[#allocation6 + $0x10]] }
  0x58   : > { %s1646_s11 = sld [smem:[#allocation6 + $0xc]]  ;;  %v1695_v43 = vstv %s1632_s4 }
  0x59   : > { %v230_v11 = vmax.f32 %v228_v7, %v229_v9  ;;  %v241_v12 = vld.sshfl [vmem:[#allocation1] sm:$0xff pattern:$0x75316420]  ;;  %v242_v13 = vld.sshfl [vmem:[#allocation1 + $0x8] sm:$0xff pattern:$0x75316420]  ;;  %v237_v18 = vmax.f32 %v235_v8, %v236_v10  ;;  %v1698_v44 = vstv %s1634_s5 }
  0x5a   : > { %v245_v14 = vsel %vm225_vm0, %v241_v12, 0.0  ;;  %v252_v15 = vsel %vm225_vm0, %v242_v13, 0.0  ;;  %s1648_s0 = sld [smem:[#allocation6 + $0x25]]  ;;  %v1701_v45 = vstv %s1636_s9 }
  0x5b   : > { %v231_v16 = vrot.slane %v230_v11, 1  ;;  %v246_v17 = vrot.slane %v245_v14, 4  ;;  %v253_v19 = vrot.slane %v252_v15, 4  ;;  %v238_v24 = vrot.slane %v237_v18, 1  ;;  %s1650_s1 = sld [smem:[#allocation6 + $0x8]] }
  0x5c   : > { %s1652_s2 = sld [smem:[#allocation6 + $0x21]]  ;;  %v1704_v46 = vstv %s1638_s10  ;;  %v1709_v47 = vstv %s1640_s17  ;;  %s1478_s10 = smov 127  }
  0x5d   : > { %v232_v20 = vmax.f32 %v230_v11, %v231_v16  ;;  %v247_v21 = vadd.f32 %v246_v17, %v245_v14  ;;  %v254_v22 = vadd.f32 %v253_v19, %v252_v15  ;;  %v239_v28 = vmax.f32 %v237_v18, %v238_v24  ;;  %s1654_s7 = sld [smem:[#allocation6 + $0x15]]  ;;  %2571 = vst [vmem:[#allocation23_spill] sm:$0xff] %v1704_v46  ;;  %s1479_s17 = smov 126  }
  0x5e   : > { %s1656_s14 = sld [smem:[#allocation6 + $0x2e]]  ;;  %v1712_v48 = vstv %s1642_s20  ;;  %v1718_v50 = vstv %s1646_s11  ;;  %s1480_s20 = smov 125  }
  0x5f   : > { %261 = vrot.lane.b32.xlu0 %v232_v20, %s1473_s18  ;;  %v248_v23 = vrot.slane %v247_v21, 2  ;;  %v255_v25 = vrot.slane %v254_v22, 2  ;;  %s1658_s13 = sld [smem:[#allocation6 + $0x9]]  ;;  %2572 = vst [vmem:[#allocation24_spill] sm:$0xff] %v1712_v48 }
  0x60   : > { %s1660_s30 = sld [smem:[#allocation6 + $0x22]]  ;;  %2573 = vst [vmem:[#allocation25_spill] sm:$0xff] %v1718_v50  ;;  %v1726_v52 = vstv %s1648_s0 }
  0x61   : > { %v249_v26 = vadd.f32 %v248_v23, %v247_v21  ;;  %v256_v29 = vadd.f32 %v255_v25, %v254_v22  ;;  %s1662_s15 = sld [smem:[#allocation6 + $0x11]]  ;;  %v1729_v53 = vstv %s1650_s1 }
  0x62   : > { %s1664_s19 = sld [smem:[#allocation6 + $0x2a]]  ;;  %v1732_v54 = vstv %s1652_s2  ;;  %s1474_s2 = smov 96  }
  0x63   : > { %v250_v27 = vrot.slane %v249_v26, 1  ;;  %v257_v31 = vrot.slane %v256_v29, 1  ;;  %s1666_s12 = sld [smem:[#allocation6 + $0xd]]  ;;  %v1735_v55 = vstv %s1654_s7 }
  0x64   : > { %s1668_s6 = sld [smem:[#allocation6 + $0x26]]  ;;  %v1738_v56 = vstv %s1656_s14 }
  0x65   : > { %v251_v30 = vadd.f32 %v250_v27, %v249_v26  ;;  %v258_v32 = vadd.f32 %v257_v31, %v256_v29  ;;  %s1672_s3 = sld [smem:[#allocation6]]  ;;  %v1741_v57 = vstv %s1658_s13 }
  0x66   : > { %s1706_s23 = sld [smem:[#allocation6 + $0x19]]  ;;  %v1744_v58 = vstv %s1660_s30  ;;  %s1477_s30 = smov 64  }
  0x67   : > { %274 = vrot.lane.b32.xlu1 %v251_v30, %s1473_s18  ;;  %263 = vrot.lane.b32.xlu0 %v239_v28, %s1473_s18  ;;  %s1720_s21 = sld [smem:[#allocation6 + $0x16]]  ;;  %v1749_v59 = vstv %s1662_s15  ;;  %s1476_s15 = smov 80  }
  0x68   : > { %s1746_s11 = sld [smem:[#allocation6 + $0x2f]]  ;;  %v1752_v60 = vstv %s1664_s19 }
  0x69   : > { %v1755_v61 = vstv %s1666_s12  ;;  %s1760_s0 = sld [smem:[#allocation6 + $0x12]]  ;;  %s1475_s12 = smov 112  }
  0x6a   : > { %v1758_v62 = vstv %s1668_s6  ;;  %s1769_s1 = sld [smem:[#allocation6 + $0x2b]] }
  0x6b   : > { %v2541_v3 = vstv %s1672_s3  ;;  %s1860_s13 = sld [smem:[#allocation6 + $0x17]] }
  0x6c   : > { %s1886_s14 = sld [smem:[#allocation6 + $0x30]] }
  0x6d   : > { %v1819_v21 = vstv %s1720_s21  ;;  %s1929_s19 = sld [smem:[#allocation6 + $0xe]] }
  0x6e   : > { %v1840_v31 = vstv %s1746_s11  ;;  %s2004_s6 = sld [smem:[#allocation6 + $0x27]] }
  0x6f   : > { %276 = vrot.lane.b32.xlu1 %v258_v32, %s1473_s18  ;;  %s1644_s18 = sld [smem:[#allocation6 + $0x29]] }
  0x70   : > { %s2066_s7 = sld [smem:[#allocation6 + $0x13]] }
  0x71   : > { %s2083_s22 = sld [smem:[#allocation6 + $0x2c]] }
  0x72   : > { %s2096_s24 = sld [smem:[#allocation6 + $0x1]] }
  0x73   : > { %s2106_s25 = sld [smem:[#allocation6 + $0x1a]] }
  0x74   : > { %s2117_s26 = sld [smem:[#allocation6 + $0x18]] }
  0x75   : > { %v1715_v49 = vstv %s1644_s18  ;;  %s2128_s27 = sld [smem:[#allocation6 + $0x31]]  ;;  %s1481_s18 = smov 124  }
  0x76   : > { %s2140_s28 = sld [smem:[#allocation6 + $0x2]] }
  0x77   : > { %s2150_s29 = sld [smem:[#allocation6 + $0x1b]] }
  0x78   : > { %s2208_s4 = sld [smem:[#allocation6 + $0x1c]] }
  0x79   : > { %s2216_s5 = sld [smem:[#allocation6 + $0x4]] }
  0x7a   : > { %s2227_s9 = sld [smem:[#allocation6 + $0x1d]] }
  0xd1   : > { %v262_v38 = vpop.permute.xlu0 %261 }
  0xd2   : > { %v1723_v51 = vsel %vm265_vm1, 0.0, %v262_v38 }
  0xd3   : > { %2574 = vst [vmem:[#allocation26_spill] sm:$0xff] %v1723_v51  ;;  %v327_v63 = vmul.f32 %v1670_v33, %v1723_v51  ;;  %v298_v1 = vmul.f32 %v1676_v35, %v1723_v51  ;;  %v356_v2 = vmul.f32 %v1680_v37, %v1723_v51  ;;  %v385_v4 = vmul.f32 %v1686_v40, %v1723_v51 }
  0xd4   : > { %v439_v5 = vmul.f32 %v1692_v42, %v1723_v51  ;;  %v469_v6 = vmul.f32 %v1698_v44, %v1723_v51  ;;  %v1779_v7 = vmul.f32 %v1712_v48, %v1723_v51  ;;  %v1783_v10 = vmul.f32 %v1704_v46, %v1723_v51 }
  0xd5   : > { %v1787_v11 = vmul.f32 %v1718_v50, %v1723_v51  ;;  %v1791_v12 = vmul.f32 %v1729_v53, %v1723_v51  ;;  %v1795_v13 = vmul.f32 %v1749_v59, %v1723_v51  ;;  %v1803_v15 = vmul.f32 %v2541_v3, %v1723_v51 }
  0xd6   : > { %v1808_v17 = vmul.f32 %v1755_v61, %v1723_v51  ;;  %v1816_v20 = vmul.f32 %v1735_v55, %v1723_v51  ;;  %v1835_v29 = vmul.f32 %v1741_v57, %v1723_v51  ;;  %v1844_v32 = vmul.f32 %v1819_v21, %v1723_v51 }
  0xd8   : > { %2575 = vst [vmem:[#allocation27_spill] sm:$0xff] %v1844_v32 }
  0xd9   : > { %v275_v8 = vpop.permute.xlu1 %274  ;;  %v264_v9 = vpop.permute.xlu0 %263 }
  0xda   : > { %v1798_v14 = vsel %vm265_vm1, 0.0, %v275_v8  ;;  %v1822_v22 = vsel %vm265_vm1, %v262_v38, %v264_v9  ;;  %v1825_v23 = vsel %vm265_vm1, %v264_v9, 0.0  ;;  %v1847_v38 = vstv %s1760_s0  ;;  %s2612_s0 = sld [smem:[#allocation40_spill]] }
  0xdb   : > { %v332_v18 = vmul.f32 %v1674_v34, %v1798_v14  ;;  %v303_v19 = vmul.f32 %v1678_v36, %v1798_v14  ;;  %v361_v24 = vmul.f32 %v1683_v39, %v1798_v14  ;;  %v390_v25 = vmul.f32 %v1689_v41, %v1798_v14  ;;  %2576 = vst [vmem:[#allocation28_spill] sm:$0xff] %v1847_v38 }
  0xdc   : > { %v444_v28 = vmul.f32 %v1695_v43, %v1798_v14  ;;  %v474_v30 = vmul.f32 %v1701_v45, %v1798_v14  ;;  %v329_v9 = vmul.f32 %v1670_v33, %v1825_v23  ;;  %v387_v51 = vmul.f32 %v1686_v40, %v1825_v23 }
  0xdd   : > { %v335_v26 = vadd.f32 %v332_v18, %v327_v63  ;;  %v306_v27 = vadd.f32 %v303_v19, %v298_v1  ;;  %v300_v63 = vmul.f32 %v1676_v35, %v1825_v23  ;;  %v299_v1 = vmul.f32 %v1676_v35, %v1822_v22 }
  0xde   : > { %v1858_v18 = vstv %s1769_s1  ;;  %v364_v19 = vadd.f32 %v361_v24, %v356_v2  ;;  %v1862_v3 = vadd.f32 %v390_v25, %v385_v4  ;;  %v1868_v0 = vadd.f32 %v444_v28, %v439_v5 }
  0xdf   : > { %341 = vrot.lane.b32.xlu1 %v335_v26, %s1474_s2  ;;  %312 = vrot.lane.b32.xlu2 %v306_v27, %s1475_s12  ;;  %2577 = vst [vmem:[#allocation29_spill] sm:$0xff] %v1858_v18  ;;  %v328_v26 = vmul.f32 %v1670_v33, %v1822_v22  ;;  %v358_v27 = vmul.f32 %v1680_v37, %v1825_v23 }
  0xe0   : > { %v357_v35 = vmul.f32 %v1680_v37, %v1822_v22  ;;  %v386_v2 = vmul.f32 %v1686_v40, %v1822_v22  ;;  %v1882_v24 = vadd.f32 %v474_v30, %v469_v6  ;;  %v441_v5 = vmul.f32 %v1692_v42, %v1825_v23 }
  0xe1   : > { %v277_v16 = vpop.permute.xlu1 %276  ;;  %v594_v40 = vmul.f32 %v1704_v46, %v1822_v22  ;;  %v471_v30 = vmul.f32 %v1698_v44, %v1825_v23  ;;  %v470_v18 = vmul.f32 %v1698_v44, %v1822_v22  ;;  %v1916_v38 = vmul.f32 %v1718_v50, %v1825_v23 }
  0xe2   : > { %v1877_v4 = vsel %vm265_vm1, %v275_v8, %v277_v16  ;;  %v1880_v33 = vsel %vm265_vm1, %v277_v16, 0.0  ;;  %2578 = vst [vmem:[#allocation30_spill] sm:$0xff] %v1882_v24  ;;  %v440_v8 = vmul.f32 %v1692_v42, %v1822_v22  ;;  %v1927_v44 = vstv %s1860_s13 }
  0xe3   : > { %v305_v37 = vmul.f32 %v1678_v36, %v1880_v33  ;;  %v304_v25 = vmul.f32 %v1678_v36, %v1877_v4  ;;  %v334_v6 = vmul.f32 %v1674_v34, %v1880_v33  ;;  %v333_v16 = vmul.f32 %v1674_v34, %v1877_v4  ;;  %2579 = vst [vmem:[#allocation31_spill] sm:$0xff] %v1916_v38 }
  0xe4   : > { %v363_v28 = vmul.f32 %v1683_v39, %v1880_v33  ;;  %v362_v46 = vmul.f32 %v1683_v39, %v1877_v4  ;;  %v392_v42 = vmul.f32 %v1689_v41, %v1880_v33  ;;  %v391_v32 = vmul.f32 %v1689_v41, %v1877_v4 }
  0xe5   : > { %v308_v36 = vadd.f32 %v305_v37, %v300_v63  ;;  %v307_v24 = vadd.f32 %v304_v25, %v299_v1  ;;  %v501_v34 = vmul.f32 %v1712_v48, %v1825_v23  ;;  %v446_v39 = vmul.f32 %v1695_v43, %v1880_v33 }
  0xe6   : > { %v599_v41 = vmul.f32 %v1709_v47, %v1877_v4  ;;  %v445_v63 = vmul.f32 %v1695_v43, %v1877_v4  ;;  %v337_v1 = vadd.f32 %v334_v6, %v329_v9  ;;  %v1932_v37 = vadd.f32 %v363_v28, %v358_v27 }
  0xe7   : > { %370 = vrot.lane.b32.xlu1 %v364_v19, %s1476_s15  ;;  %316 = vrot.lane.b32.xlu0 %v308_v36, %s1475_s12  ;;  %v336_v19 = vadd.f32 %v333_v16, %v328_v26  ;;  %v476_v25 = vmul.f32 %v1701_v45, %v1880_v33  ;;  %v1936_v36 = vadd.f32 %v362_v46, %v357_v35  ;;  %v1953_v26 = vstv %s1886_s14 }
  0xe8   : > { %314 = vrot.lane.b32.xlu2 %v307_v24, %s1475_s12  ;;  %v1938_v50 = vadd.f32 %v392_v42, %v387_v51  ;;  %v506_v43 = vmul.f32 %v1715_v49, %v1880_v33  ;;  %v475_v38 = vmul.f32 %v1701_v45, %v1877_v4  ;;  %v1944_v48 = vadd.f32 %v391_v32, %v386_v2 }
  0xe9   : > { %v1946_v24 = vadd.f32 %v446_v39, %v441_v5  ;;  %v1950_v9 = vmul.f32 %v1726_v52, %v1880_v33  ;;  %v1955_v46 = vadd.f32 %v599_v41, %v594_v40  ;;  %v1957_v51 = vadd.f32 %v445_v63, %v440_v8 }
  0xea   : > { %v1961_v27 = vmul.f32 %v1715_v49, %v1877_v4  ;;  %v504_v45 = vmul.f32 %v1715_v49, %v1798_v14  ;;  %v1965_v32 = vadd.f32 %v476_v25, %v471_v30  ;;  %v598_v35 = vmul.f32 %v1709_v47, %v1798_v14 }
  0xeb   : > { %v628_v2 = vmul.f32 %v1726_v52, %v1798_v14  ;;  %v748_v5 = vmul.f32 %v1729_v53, %v1825_v23  ;;  %v1973_v40 = vadd.f32 %v506_v43, %v501_v34  ;;  %v1975_v8 = vadd.f32 %v475_v38, %v470_v18 }
  0xec   : > { %v1978_v6 = vadd.f32 %v504_v45, %v1779_v7  ;;  %v753_v49 = vmul.f32 %v1732_v54, %v1880_v33  ;;  %v1983_v16 = vadd.f32 %v598_v35, %v1783_v10  ;;  %v747_v30 = vmul.f32 %v1729_v53, %v1822_v22 }
  0xed   : > { %v1986_v28 = vadd.f32 %v628_v2, %v1787_v11  ;;  %v752_v42 = vmul.f32 %v1732_v54, %v1877_v4  ;;  %v751_v10 = vmul.f32 %v1732_v54, %v1798_v14  ;;  %v531_v11 = vmul.f32 %v1735_v55, %v1825_v23 }
  0xee   : > { %v1995_v7 = vadd.f32 %v753_v49, %v748_v5  ;;  %v2002_v38 = vstv %s1929_s19  ;;  %v530_v18 = vmul.f32 %v1735_v55, %v1822_v22  ;;  %v535_v54 = vmul.f32 %v1738_v56, %v1877_v4 }
  0xef   : > { %399 = vrot.lane.b32.xlu1 %v1862_v3, %s1477_s30  ;;  %345 = vrot.lane.b32.xlu0 %v337_v1, %s1474_s2  ;;  %v2007_v53 = vadd.f32 %v752_v42, %v747_v30  ;;  %v536_v3 = vmul.f32 %v1738_v56, %v1880_v33  ;;  %v2016_v34 = vadd.f32 %v751_v10, %v1791_v12 }
  0xf0   : > { %343 = vrot.lane.b32.xlu2 %v336_v19, %s1474_s2  ;;  %v900_v39 = vmul.f32 %v1741_v57, %v1822_v22  ;;  %v905_v41 = vmul.f32 %v1744_v58, %v1877_v4  ;;  %v655_v63 = vmul.f32 %v1749_v59, %v1825_v23  ;;  %v2026_v19 = vadd.f32 %v535_v54, %v530_v18 }
  0xf1   : > { %v2024_v1 = vadd.f32 %v536_v3, %v531_v11  ;;  %v660_v55 = vmul.f32 %v1752_v60, %v1880_v33  ;;  %v654_v12 = vmul.f32 %v1749_v59, %v1822_v22  ;;  %v659_v43 = vmul.f32 %v1752_v60, %v1877_v4 }
  0xf2   : > { %v2032_v25 = vadd.f32 %v905_v41, %v900_v39  ;;  %v658_v45 = vmul.f32 %v1752_v60, %v1798_v14  ;;  %v778_v35 = vmul.f32 %v1755_v61, %v1825_v23  ;;  %v783_v5 = vmul.f32 %v1758_v62, %v1880_v33 }
  0xf3   : > { %v2040_v2 = vadd.f32 %v660_v55, %v655_v63  ;;  %v777_v49 = vmul.f32 %v1755_v61, %v1822_v22  ;;  %v782_v59 = vmul.f32 %v1758_v62, %v1877_v4  ;;  %v2048_v30 = vadd.f32 %v659_v43, %v654_v12  ;;  %v2581_v55 = vld [vmem:[#allocation28_spill] sm:$0xff]  ;;  %v2582_v43 = vld [vmem:[#allocation29_spill] sm:$0xff] }
  0xf4   : > { %v2051_v42 = vadd.f32 %v658_v45, %v1795_v13  ;;  %v2580_v60 = vstv %s1706_s23  ;;  %v781_v11 = vmul.f32 %v1758_v62, %v1798_v14  ;;  %v2058_v3 = vadd.f32 %v783_v5, %v778_v35  ;;  %v2583_v35 = vld [vmem:[#allocation27_spill] sm:$0xff]  ;;  %s1239_s23 = sshll.u32 %s1523_s16, 3  ;;  %s1062_s16 = scalar_lea.sflag [#allocation4], %s1598_s8 }
  0xf5   : > { %v290_v10 = vmul.f32 %v2580_v60, %v1798_v14  ;;  %v2060_v18 = vadd.f32 %v782_v59, %v777_v49  ;;  %v534_v61 = vmul.f32 %v1738_v56, %v1798_v14  ;;  %v901_v54 = vmul.f32 %v1741_v57, %v1825_v23  ;;  %s1073_s1 = scalar_lea.hbm %s2612_s0, %s1239_s23 }
  0xf6   : > { %v2076_v13 = vadd.f32 %v781_v11, %v1808_v17  ;;  %v906_v56 = vmul.f32 %v1744_v58, %v1880_v33  ;;  %v2081_v39 = vstv %s2004_s6  ;;  %v904_v57 = vmul.f32 %v1744_v58, %v1798_v14 }
  0xf7   : > { %453 = vrot.lane.b32.xlu1 %v1868_v0, %s1475_s12  ;;  %374 = vrot.lane.b32.xlu0 %v1932_v37, %s1476_s15  ;;  %v2073_v62 = vadd.f32 %v290_v10, %v1803_v15  ;;  %v2088_v0 = vadd.f32 %v534_v61, %v1816_v20  ;;  %v685_v15 = vmul.f32 %v1819_v21, %v1825_v23  ;;  %v2585_v10 = vstv %s1672_s3  ;;  %s2169_s3 = sld [smem:[#allocation6 + $0x3]] }
  0xf8   : > { %372 = vrot.lane.b32.xlu2 %v1936_v36, %s1476_s15  ;;  %v690_v17 = vmul.f32 %v1840_v31, %v1880_v33  ;;  %v2098_v37 = vadd.f32 %v906_v56, %v901_v54  ;;  %v684_v36 = vmul.f32 %v1819_v21, %v1822_v22  ;;  %v689_v20 = vmul.f32 %v1840_v31, %v1877_v4 }
  0xf9   : > { %v688_v58 = vmul.f32 %v1840_v31, %v1798_v14  ;;  %v2109_v41 = vadd.f32 %v904_v57, %v1835_v29  ;;  %v808_v12 = vmul.f32 %v2581_v55, %v1825_v23  ;;  %v813_v21 = vmul.f32 %v2582_v43, %v1880_v33 }
  0xfa   : > { %v2111_v63 = vadd.f32 %v690_v17, %v685_v15  ;;  %v2119_v45 = vadd.f32 %v689_v20, %v684_v36  ;;  %v807_v31 = vmul.f32 %v2581_v55, %v1822_v22  ;;  %v812_v29 = vmul.f32 %v2582_v43, %v1877_v4 }
  0xfb   : > { %v2122_v5 = vadd.f32 %v688_v58, %v2583_v35  ;;  %v2130_v49 = vadd.f32 %v813_v21, %v808_v12  ;;  %v2584_v59 = vmov %v2580_v60  ;;  %v287_v11 = vmul.f32 %v2585_v10, %v1822_v22  ;;  %v2588_v12 = vld [vmem:[#allocation30_spill] sm:$0xff] }
  0xfc   : > { %v291_v60 = vmul.f32 %v2584_v59, %v1877_v4  ;;  %v838_v61 = vmul.f32 %v1927_v44, %v1825_v23  ;;  %v2142_v54 = vadd.f32 %v812_v29, %v807_v31  ;;  %v843_v56 = vmul.f32 %v1953_v26, %v1880_v33 }
  0xfd   : > { %v931_v57 = vmul.f32 %v2002_v38, %v1825_v23  ;;  %v936_v15 = vmul.f32 %v2081_v39, %v1880_v33  ;;  %v930_v36 = vmul.f32 %v2002_v38, %v1822_v22  ;;  %v935_v20 = vmul.f32 %v2081_v39, %v1877_v4 }
  0xfe   : > { %2586 = vst [vmem:[#allocation28_spill] sm:$0xff] %v2142_v54  ;;  %v2152_v17 = vadd.f32 %v291_v60, %v287_v11  ;;  %v958_v58 = vstv %s2066_s7  ;;  %v2163_v21 = vadd.f32 %v843_v56, %v838_v61  ;;  %v963_v29 = vstv %s2083_s22  ;;  %v2592_v11 = vld [vmem:[#allocation26_spill] sm:$0xff]  ;;  %s1415_s22 = scalar_lea.hbm %s2612_s0, 16 }
  0xff   : > { %483 = vrot.lane.b32.xlu1 %v2588_v12, %s1474_s2  ;;  %403 = vrot.lane.b32.xlu0 %v1938_v50, %s1477_s30  ;;  %v2165_v35 = vadd.f32 %v936_v15, %v931_v57  ;;  %v961_v31 = vmul.f32 %v958_v58, %v1825_v23  ;;  %v2173_v59 = vadd.f32 %v935_v20, %v930_v36  ;;  %v422_v57 = vstv %s2096_s24 }
 0x100   : > { %2587 = vst [vmem:[#allocation29_spill] sm:$0xff] %v2152_v17  ;;  %401 = vrot.lane.b32.xlu2 %v1944_v48, %s1477_s30  ;;  %v966_v60 = vmul.f32 %v963_v29, %v1880_v33  ;;  %v837_v50 = vmul.f32 %v1927_v44, %v1822_v22  ;;  %v842_v10 = vmul.f32 %v1953_v26, %v1877_v4  ;;  %v427_v15 = vstv %s2106_s25 }
 0x101   : > { %2589 = vst [vmem:[#allocation27_spill] sm:$0xff] %v2163_v21  ;;  %v806_v61 = vmul.f32 %v2581_v55, %v2592_v11  ;;  %v811_v56 = vmul.f32 %v2582_v43, %v1798_v14  ;;  %v423_v20 = vmul.f32 %v422_v57, %v2592_v11  ;;  %v428_v12 = vmul.f32 %v427_v15, %v1798_v14 }
 0x102   : > { %2590 = vst [vmem:[#allocation30_spill] sm:$0xff] %v2165_v35  ;;  %v2186_v48 = vadd.f32 %v966_v60, %v961_v31  ;;  %v2188_v36 = vadd.f32 %v842_v10, %v837_v50  ;;  %v988_v35 = vstv %s2117_s26  ;;  %v993_v21 = vstv %s2128_s27 }
 0x103   : > { %2591 = vst [vmem:[#allocation32_spill] sm:$0xff] %v2173_v59  ;;  %v2192_v59 = vadd.f32 %v811_v56, %v806_v61  ;;  %v960_v55 = vmul.f32 %v958_v58, %v1822_v22  ;;  %v2197_v17 = vadd.f32 %v428_v12, %v423_v20  ;;  %v990_v43 = vmul.f32 %v988_v35, %v1822_v22 }
 0x104   : > { %v995_v54 = vmul.f32 %v993_v21, %v1877_v4  ;;  %v965_v31 = vmul.f32 %v963_v29, %v1877_v4  ;;  %v929_v60 = vmul.f32 %v2002_v38, %v2592_v11  ;;  %v934_v50 = vmul.f32 %v2081_v39, %v1798_v14 }
 0x105   : > { %2593 = vst [vmem:[#allocation26_spill] sm:$0xff] %v2197_v17  ;;  %v576_v10 = vstv %s2140_s28  ;;  %v581_v61 = vstv %s2150_s29  ;;  %v959_v39 = vmul.f32 %v958_v58, %v2592_v11  ;;  %v429_v58 = vmul.f32 %v427_v15, %v1877_v4 }
 0x106   : > { %v2210_v56 = vadd.f32 %v995_v54, %v990_v43  ;;  %v2212_v20 = vadd.f32 %v965_v31, %v960_v55  ;;  %v579_v12 = vmul.f32 %v576_v10, %v1825_v23  ;;  %v584_v17 = vmul.f32 %v581_v61, %v1880_v33 }
 0x107   : > { %457 = vrot.lane.b32.xlu0 %v1946_v24, %s1475_s12  ;;  %609 = vrot.lane.b32.xlu1 %v1955_v46, %s1475_s12  ;;  %v2222_v38 = vadd.f32 %v934_v50, %v929_v60  ;;  %v964_v54 = vmul.f32 %v963_v29, %v1798_v14  ;;  %v729_v55 = vstv %s2169_s3  ;;  %v836_v24 = vmul.f32 %v1927_v44, %v2592_v11 }
 0x108   : > { %455 = vrot.lane.b32.xlu2 %v1957_v51, %s1475_s12  ;;  %v2231_v43 = vadd.f32 %v584_v17, %v579_v12  ;;  %v841_v46 = vmul.f32 %v1953_v26, %v1798_v14  ;;  %v425_v31 = vmul.f32 %v422_v57, %v1825_v23  ;;  %v430_v29 = vmul.f32 %v427_v15, %v1880_v33 }
 0x109   : > { %v2238_v60 = vadd.f32 %v964_v54, %v959_v39  ;;  %v424_v50 = vmul.f32 %v422_v57, %v1822_v22  ;;  %v583_v17 = vmul.f32 %v581_v61, %v1877_v4  ;;  %v578_v44 = vmul.f32 %v576_v10, %v1822_v22 }
 0x10a   : > { %2594 = vst [vmem:[#allocation33_spill] sm:$0xff] %v2231_v43  ;;  %v2243_v51 = vadd.f32 %v841_v46, %v836_v24  ;;  %v577_v12 = vmul.f32 %v576_v10, %v2592_v11  ;;  %v2248_v26 = vadd.f32 %v430_v29, %v425_v31  ;;  %v582_v39 = vmul.f32 %v581_v61, %v1798_v14 }
 0x10b   : > { %v2250_v43 = vadd.f32 %v429_v58, %v424_v50  ;;  %v989_v54 = vmul.f32 %v988_v35, %v2592_v11  ;;  %v2254_v15 = vadd.f32 %v583_v17, %v578_v44  ;;  %v994_v57 = vmul.f32 %v993_v21, %v1798_v14 }
 0x10c   : > { %2595 = vst [vmem:[#allocation34_spill] sm:$0xff] %v2243_v51  ;;  %v991_v24 = vmul.f32 %v988_v35, %v1825_v23  ;;  %v996_v46 = vmul.f32 %v993_v21, %v1880_v33  ;;  %v2259_v51 = vadd.f32 %v582_v39, %v577_v12  ;;  %v731_v10 = vmul.f32 %v729_v55, %v1822_v22 }
 0x10d   : > { %2596 = vst [vmem:[#allocation35_spill] sm:$0xff] %v2248_v26  ;;  %v732_v31 = vmul.f32 %v729_v55, %v1825_v23  ;;  %v734_v58 = vstv %s2208_s4  ;;  %v2264_v61 = vadd.f32 %v994_v57, %v989_v54  ;;  %v730_v21 = vmul.f32 %v729_v55, %v2592_v11 }
 0x10e   : > { %v2266_v29 = vadd.f32 %v996_v46, %v991_v24  ;;  %v736_v50 = vmul.f32 %v734_v58, %v1877_v4  ;;  %v737_v17 = vmul.f32 %v734_v58, %v1880_v33  ;;  %v735_v35 = vmul.f32 %v734_v58, %v1798_v14  ;;  %v2598_v58 = vld [vmem:[#allocation23_spill] sm:$0xff] }
 0x10f   : > { %487 = vrot.lane.b32.xlu0 %v1965_v32, %s1474_s2  ;;  %517 = vrot.lane.b32.xlu1 %v1973_v40, %s1476_s15  ;;  %v882_v44 = vstv %s2216_s5  ;;  %v887_v12 = vstv %s2227_s9  ;;  %v595_v26 = vmul.f32 %v2598_v58, %v1825_v23 }
 0x110   : > { %485 = vrot.lane.b32.xlu2 %v1975_v8, %s1474_s2  ;;  %v2280_v39 = vadd.f32 %v736_v50, %v731_v10  ;;  %v2282_v54 = vadd.f32 %v737_v17, %v732_v31  ;;  %v885_v57 = vmul.f32 %v882_v44, %v1825_v23  ;;  %v890_v32 = vmul.f32 %v887_v12, %v1880_v33  ;;  %v2599_v50 = vld [vmem:[#allocation24_spill] sm:$0xff] }
 0x111   : > { %v2286_v24 = vadd.f32 %v735_v35, %v730_v21  ;;  %v884_v40 = vmul.f32 %v882_v44, %v1822_v22  ;;  %v889_v55 = vmul.f32 %v887_v12, %v1877_v4  ;;  %v883_v46 = vmul.f32 %v882_v44, %v2592_v11 }
 0x112   : > { %2597 = vst [vmem:[#allocation36_spill] sm:$0xff] %v2282_v54  ;;  %v600_v8 = vmul.f32 %v1709_v47, %v1880_v33  ;;  %v2295_v10 = vadd.f32 %v890_v32, %v885_v57  ;;  %v888_v31 = vmul.f32 %v887_v12, %v1798_v14  ;;  %v500_v17 = vmul.f32 %v2599_v50, %v1822_v22  ;;  %v2600_v54 = vld [vmem:[#allocation31_spill] sm:$0xff]  ;;  %v2601_v14 = vld [vmem:[#allocation25_spill] sm:$0xff] }
 0x113   : > { %v2300_v21 = vadd.f32 %v889_v55, %v884_v40  ;;  %v633_v11 = vadd.f32 %v1950_v9, %v2600_v54  ;;  %v629_v47 = vmul.f32 %v1726_v52, %v1877_v4  ;;  %v624_v33 = vmul.f32 %v2601_v14, %v1822_v22  ;;  %v2607_v55 = vld [vmem:[#allocation26_spill] sm:$0xff] }
 0x114   : > { %v2302_v35 = vadd.f32 %v888_v31, %v883_v46  ;;  %v508_v44 = vadd.f32 %v1961_v27, %v500_v17  ;;  %v603_v23 = vadd.f32 %v600_v8, %v595_v26 }
 0x115   : > { %v632_v12 = vadd.f32 %v629_v47, %v624_v33 }
 0x117   : > { %641 = vrot.lane.b32.xlu1 %v633_v11, %s1474_s2  ;;  %515 = vrot.lane.b32.xlu0 %v508_v44, %s1476_s15  ;;  %v2608_v11 = vld [vmem:[#allocation33_spill] sm:$0xff] }
 0x118   : > { %611 = vrot.lane.b32.xlu2 %v603_v23, %s1475_s12 }
 0x11f   : > { %513 = vrot.lane.b32.xlu1 %v1978_v6, %s1476_s15  ;;  %639 = vrot.lane.b32.xlu0 %v632_v12, %s1474_s2 }
 0x120   : > { %607 = vrot.lane.b32.xlu2 %v1983_v16, %s1475_s12 }
 0x127   : > { %637 = vrot.lane.b32.xlu1 %v1986_v28, %s1474_s2  ;;  %764 = vrot.lane.b32.xlu0 %v1995_v7, %s1475_s12 }
 0x128   : > { %762 = vrot.lane.b32.xlu2 %v2007_v53, %s1475_s12  ;;  %v2602_v53 = vld [vmem:[#allocation28_spill] sm:$0xff] }
 0x12f   : > { %760 = vrot.lane.b32.xlu1 %v2016_v34, %s1475_s12  ;;  %547 = vrot.lane.b32.xlu0 %v2024_v1, %s1477_s30 }
 0x130   : > { %545 = vrot.lane.b32.xlu2 %v2026_v19, %s1477_s30 }
 0x137   : > { %915 = vrot.lane.b32.xlu1 %v2032_v25, %s1475_s12  ;;  %671 = vrot.lane.b32.xlu0 %v2040_v2, %s1476_s15 }
 0x138   : > { %669 = vrot.lane.b32.xlu2 %v2048_v30, %s1476_s15 }
 0x139   : > { %v313_v52 = vpop.permute.xlu2 %312 }
 0x13f   : > { %667 = vrot.lane.b32.xlu1 %v2051_v42, %s1476_s15  ;;  %794 = vrot.lane.b32.xlu0 %v2058_v3, %s1474_s2  ;;  %v2603_v42 = vld [vmem:[#allocation29_spill] sm:$0xff] }
 0x140   : > { %792 = vrot.lane.b32.xlu2 %v2060_v18, %s1474_s2  ;;  %v2604_v18 = vld [vmem:[#allocation27_spill] sm:$0xff] }
 0x142   : > { %v315_v22 = vpop.permute.xlu2 %314 }
 0x143   : > { %v319_v4 = vsel %vm318_vm2, %v313_v52, %v315_v22 }
 0x144   : > { %v323_v9 = vadd.f32 %v319_v4, %v2073_v62  ;;  %v2605_v62 = vld [vmem:[#allocation30_spill] sm:$0xff] }
 0x147   : > { %790 = vrot.lane.b32.xlu1 %v2076_v13, %s1474_s2  ;;  %543 = vrot.lane.b32.xlu0 %v2088_v0, %s1477_s30  ;;  %v2606_v13 = vld [vmem:[#allocation32_spill] sm:$0xff] }
 0x148   : > { %917 = vrot.lane.b32.xlu2 %v2098_v37, %s1475_s12 }
 0x14a   : > { %v344_v27 = vpop.permute.xlu2 %343 }
 0x14f   : > { %913 = vrot.lane.b32.xlu1 %v2109_v41, %s1475_s12  ;;  %701 = vrot.lane.b32.xlu0 %v2111_v63, %s1477_s30  ;;  %s2614_s12 = sshll.u32 %s1598_s8, 3 }
 0x150   : > { %699 = vrot.lane.b32.xlu2 %v2119_v45, %s1477_s30  ;;  %s217_s13 = scalar_lea.vmem [#allocation9], %s2614_s12 }
 0x151   : > { %v342_v6 = vpop.permute.xlu1 %341  ;;  %s1075_s14 = sshll.u32 %s217_s13, 4  ;;  %s1076_s14 = int_to_ptr.vmem [resolvable:$true] %s1075_s14 }
 0x152   : > { %v348_v16 = vsel %vm347_vm3, %v342_v6, %v344_v27  ;;  %v373_v28 = vpop.permute.xlu2 %372 }
 0x153   : > { %v352_v7 = vadd.f32 %v348_v16, %v323_v9 }
 0x157   : > { %697 = vrot.lane.b32.xlu1 %v2122_v5, %s1477_s30  ;;  %824 = vrot.lane.b32.xlu0 %v2130_v49, %s1476_s15 }
 0x158   : > { %822 = vrot.lane.b32.xlu2 %v2602_v53, %s1476_s15 }
 0x159   : > { %v371_v34 = vpop.permute.xlu1 %370  ;;  %v317_v1 = vpop.permute.xlu0 %316 }
 0x15a   : > { %v377_v19 = vsel %vm376_vm4, %v371_v34, %v373_v28  ;;  %v320_v25 = vsel %vm318_vm2, %v315_v22, %v317_v1  ;;  %v402_v2 = vpop.permute.xlu2 %401 }
 0x15b   : > { %v381_v30 = vadd.f32 %v377_v19, %v352_v7  ;;  %v324_v3 = vadd.f32 %v320_v25, %v2603_v42 }
 0x15f   : > { %854 = vrot.lane.b32.xlu1 %v2604_v18, %s1477_s30  ;;  %947 = vrot.lane.b32.xlu0 %v2605_v62, %s1474_s2 }
 0x160   : > { %945 = vrot.lane.b32.xlu2 %v2606_v13, %s1474_s2 }
 0x161   : > { %v400_v0 = vpop.permute.xlu1 %399  ;;  %v346_v37 = vpop.permute.xlu0 %345 }
 0x162   : > { %v406_v41 = vsel %vm405_vm5, %v400_v0, %v402_v2  ;;  %v349_v63 = vsel %vm347_vm3, %v344_v27, %v346_v37  ;;  %v456_v45 = vpop.permute.xlu2 %455 }
 0x163   : > { %v410_v5 = vadd.f32 %v406_v41, %v381_v30  ;;  %v353_v49 = vadd.f32 %v349_v63, %v324_v3 }
 0x167   : > { %977 = vrot.lane.b32.xlu1 %v2186_v48, %s1476_s15  ;;  %852 = vrot.lane.b32.xlu0 %v2188_v36, %s1477_s30 }
 0x168   : > { %820 = vrot.lane.b32.xlu2 %v2192_v59, %s1476_s15 }
 0x169   : > { %v454_v26 = vpop.permute.xlu1 %453  ;;  %v375_v54 = vpop.permute.xlu0 %374 }
 0x16a   : > { %v459_v57 = vsel %vm318_vm2, %v454_v26, %v456_v45  ;;  %v378_v32 = vsel %vm376_vm4, %v373_v28, %v375_v54  ;;  %v486_v40 = vpop.permute.xlu2 %485 }
 0x16b   : > { %v464_v46 = vadd.f32 %v459_v57, %v2607_v55  ;;  %v382_v58 = vadd.f32 %v378_v32, %v353_v49 }
 0x16f   : > { %1005 = vrot.lane.b32.xlu1 %v2210_v56, %s1477_s30  ;;  %975 = vrot.lane.b32.xlu0 %v2212_v20, %s1476_s15  ;;  %v2609_v56 = vld [vmem:[#allocation34_spill] sm:$0xff] }
 0x170   : > { %943 = vrot.lane.b32.xlu2 %v2222_v38, %s1474_s2 }
 0x171   : > { %v484_v59 = vpop.permute.xlu1 %483  ;;  %v404_v48 = vpop.permute.xlu0 %403 }
 0x172   : > { %v489_v36 = vsel %vm347_vm3, %v484_v59, %v486_v40  ;;  %v407_v8 = vsel %vm405_vm5, %v402_v2, %v404_v48  ;;  %v612_v31 = vpop.permute.xlu2 %611 }
 0x173   : > { %v494_v50 = vadd.f32 %v489_v36, %v464_v46  ;;  %v411_v17 = vadd.f32 %v407_v8, %v382_v58  ;;  %v2393_v44 = vadd.f32 %v612_v31, %v2608_v11 }
 0x175   : > { %v415_v16 = vrot.slane %v411_v17, 7 }
 0x177   : > { %973 = vrot.lane.b32.xlu0 %v2238_v60, %s1476_s15  ;;  %s1077_s15 = sshll.u32 %s1073_s1, 4  ;;  %s1078_s15 = int_to_ptr.hbm [resolvable:$true] %s1077_s15 }
 0x178   : > { %850 = vrot.lane.b32.xlu2 %v2609_v56, %s1477_s30  ;;  %s1409_s19 = sshra.s32 %s1078_s15, 4  ;;  %s1410_s19 = int_to_ptr.hbm [resolvable:$true] %s1409_s19 }
 0x179   : > { %v458_v20 = vpop.permute.xlu0 %457  ;;  %v610_v38 = vpop.permute.xlu1 %609  ;;  %p1416_p9 = scmp.lt.s32.totalorder %s1410_s19, %s2612_s0 }
 0x17a   : > { %v460_v23 = vsel %vm318_vm2, %v456_v45, %v458_v20  ;;  %v614_v47 = vsel %vm318_vm2, %v610_v38, %v612_v31  ;;  %v608_v14 = vpop.permute.xlu2 %607 }
 0x17b   : > { %v465_v33 = vadd.f32 %v460_v23, %v2250_v43  ;;  %v2403_v12 = vadd.f32 %v614_v47, %v2254_v15  ;;  %v613_v52 = vsel %vm318_vm2, %v608_v14, %v610_v38 }
 0x17c   : > { %v2407_v22 = vadd.f32 %v613_v52, %v2259_v51  ;;  %v2415_v51 = vsel %vm416_vm6, %v410_v5, %v415_v16 }
 0x17f   : > { %1003 = vrot.lane.b32.xlu0 %v2264_v61, %s1477_s30 }
 0x180   : > { %1007 = vrot.lane.b32.xlu2 %v2266_v29, %s1477_s30  ;;  %s1411_s30 = scalar_lea.hbm %s1410_s19, 8 }
 0x181   : > { %v488_v60 = vpop.permute.xlu0 %487  ;;  %v518_v4 = vpop.permute.xlu1 %517  ;;  %p1412_p1 = scmp.ne.s32.totalorder %s1410_s19, %s1411_s30  ;;  %p1417_p2 = scmp.lt.s32.totalorder %s1415_s22, %s1411_s30 }
 0x182   : > { %v490_v9 = vsel %vm347_vm3, %v486_v40, %v488_v60  ;;  %v763_v27 = vpop.permute.xlu2 %762 }
 0x183   : > { %v495_v43 = vadd.f32 %v490_v9, %v465_v33  ;;  %p1413_p4 = pnand %p1412_p1, %p1568_p3  ;;  %p1418_p10 = por %p1417_p2, %p1416_p9 }
 0x185   : > { %p1414_p8 = pneg %p1413_p4 }
 0x187   : > { %p1419_p11 = pnand %p1418_p10, %p1414_p8 }
 0x189   : > { %v642_v6 = vpop.permute.xlu1 %641  ;;  %v516_v15 = vpop.permute.xlu0 %515 }
 0x18a   : > { %v546_v28 = vpop.permute.xlu2 %545  ;;  %v520_v54 = vsel %vm376_vm4, %v516_v15, %v518_v4  ;;  %v650_v52 = vadd.f32 %v642_v6, %v2393_v44 }
 0x191   : > { %v514_v7 = vpop.permute.xlu1 %513  ;;  %v640_v53 = vpop.permute.xlu0 %639 }
 0x192   : > { %v670_v61 = vpop.permute.xlu2 %669  ;;  %v519_v40 = vsel %vm376_vm4, %v514_v7, %v516_v15 }
 0x193   : > { %v524_v58 = vadd.f32 %v519_v40, %v494_v50 }
 0x199   : > { %v638_v34 = vpop.permute.xlu1 %637  ;;  %v2417_v1 = vpop.permute.xlu0 %764 }
 0x19a   : > { %v767_v29 = vsel %vm318_vm2, %v763_v27, %v2417_v1  ;;  %v2421_v19 = vpop.permute.xlu2 %792 }
 0x19b   : > { %v2424_v25 = vadd.f32 %v767_v29, %v2280_v39  ;;  %v2610_v39 = vld [vmem:[#allocation35_spill] sm:$0xff] }
 0x19c   : > { %v466_v45 = vadd.f32 %v458_v20, %v2610_v39  ;;  %v644_v20 = vsel %vm347_vm3, %v640_v53, %v642_v6 }
 0x19d   : > { %v649_v14 = vadd.f32 %v644_v20, %v2403_v12 }
 0x19e   : > { %v496_v26 = vadd.f32 %v488_v60, %v466_v45  ;;  %v643_v60 = vsel %vm347_vm3, %v638_v34, %v640_v53 }
 0x19f   : > { %v648_v16 = vadd.f32 %v643_v60, %v2407_v22 }
 0x1a0   : > { %v526_v32 = vadd.f32 %v518_v4, %v496_v26 }
 0x1a1   : > { %v761_v2 = vpop.permute.xlu1 %760  ;;  %v548_v30 = vpop.permute.xlu0 %547 }
 0x1a2   : > { %v766_v42 = vsel %vm318_vm2, %v761_v2, %v763_v27  ;;  %v918_v3 = vpop.permute.xlu2 %917  ;;  %v550_v57 = vsel %vm405_vm5, %v546_v28, %v548_v30  ;;  %v556_v46 = vadd.f32 %v548_v30, %v526_v32 }
 0x1a3   : > { %v2428_v18 = vadd.f32 %v766_v42, %v2286_v24  ;;  %v2431_v62 = vadd.f32 %v918_v3, %v2295_v10  ;;  %v525_v10 = vadd.f32 %v520_v54, %v495_v43 }
 0x1a4   : > { %v563_v17 = vrot.slane %v556_v46, 6 }
 0x1a5   : > { %v555_v55 = vadd.f32 %v550_v57, %v525_v10 }
 0x1a7   : > { %v562_v36 = vrot.slane %v555_v55, 7 }
 0x1a9   : > { %v916_v13 = vpop.permute.xlu1 %915  ;;  %v672_v0 = vpop.permute.xlu0 %671 }
 0x1aa   : > { %v920_v37 = vsel %vm318_vm2, %v916_v13, %v918_v3  ;;  %v700_v41 = vpop.permute.xlu2 %699  ;;  %v674_v23 = vsel %vm376_vm4, %v670_v61, %v672_v0  ;;  %v680_v43 = vadd.f32 %v672_v0, %v650_v52  ;;  %v2611_v3 = vld [vmem:[#allocation36_spill] sm:$0xff] }
 0x1ab   : > { %v2435_v63 = vadd.f32 %v920_v37, %v2300_v21  ;;  %v679_v9 = vadd.f32 %v674_v23, %v649_v14  ;;  %v773_v22 = vadd.f32 %v2417_v1, %v2611_v3 }
 0x1b1   : > { %v668_v5 = vpop.permute.xlu1 %667  ;;  %v795_v49 = vpop.permute.xlu0 %794 }
 0x1b2   : > { %v823_v24 = vpop.permute.xlu2 %822  ;;  %v673_v15 = vsel %vm376_vm4, %v668_v5, %v670_v61  ;;  %v803_v0 = vadd.f32 %v795_v49, %v773_v22 }
 0x1b3   : > { %v678_v29 = vadd.f32 %v673_v15, %v648_v16 }
 0x1b9   : > { %v791_v59 = vpop.permute.xlu1 %790  ;;  %v544_v21 = vpop.permute.xlu0 %543 }
 0x1ba   : > { %v549_v48 = vsel %vm405_vm5, %v544_v21, %v546_v28  ;;  %v2442_v31 = vpop.permute.xlu2 %945  ;;  %v796_v37 = vsel %vm347_vm3, %v791_v59, %v2421_v19 }
 0x1bb   : > { %v554_v8 = vadd.f32 %v549_v48, %v524_v58  ;;  %v801_v54 = vadd.f32 %v796_v37, %v2428_v18 }
 0x1bd   : > { %v564_v11 = vsel %vm416_vm6, %v554_v8, %v562_v36 }
 0x1be   : > { %v566_v56 = vsel %vm565_vm7, %v564_v11, %v563_v17 }
 0x1bf   : > { %567 = vrot.lane.b32.xlu1 %v566_v56, %s1478_s10 }
 0x1c1   : > { %v914_v38 = vpop.permute.xlu1 %913  ;;  %v702_v50 = vpop.permute.xlu0 %701 }
 0x1c2   : > { %v919_v47 = vsel %vm318_vm2, %v914_v38, %v916_v13  ;;  %v704_v4 = vsel %vm405_vm5, %v700_v41, %v702_v50  ;;  %v821_v27 = vpop.permute.xlu2 %820  ;;  %v710_v7 = vadd.f32 %v702_v50, %v680_v43  ;;  %v797_v13 = vsel %vm347_vm3, %v2421_v19, %v795_v49 }
 0x1c3   : > { %v2451_v33 = vadd.f32 %v919_v47, %v2302_v35  ;;  %v709_v28 = vadd.f32 %v704_v4, %v679_v9  ;;  %v802_v39 = vadd.f32 %v797_v13, %v2424_v25  ;;  %v826_v5 = vsel %vm376_vm4, %v821_v27, %v823_v24 }
 0x1c4   : > { %v717_v6 = vrot.slane %v710_v7, 6  ;;  %v831_v55 = vadd.f32 %v826_v5, %v801_v54 }
 0x1c5   : > { %v716_v30 = vrot.slane %v709_v28, 7 }
 0x1c9   : > { %v698_v12 = vpop.permute.xlu1 %697  ;;  %v825_v2 = vpop.permute.xlu0 %824 }
 0x1ca   : > { %v703_v35 = vsel %vm405_vm5, %v698_v12, %v700_v41  ;;  %v944_v42 = vpop.permute.xlu2 %943  ;;  %v827_v41 = vsel %vm376_vm4, %v823_v24, %v825_v2  ;;  %v833_v26 = vadd.f32 %v825_v2, %v803_v0  ;;  %v558_v12 = vld [vmem:[#allocation7 + $0x1] ss:$8 sm:$0x3] }
 0x1cb   : > { %v708_v44 = vadd.f32 %v703_v35, %v678_v29  ;;  %v832_v57 = vadd.f32 %v827_v41, %v802_v39  ;;  %v949_v38 = vsel %vm347_vm3, %v944_v42, %v2442_v31  ;;  %v1018_v41 = vld [vmem:[#allocation7 + $0x4] ss:$8 sm:$0x3] }
 0x1cc   : > { %v954_v52 = vadd.f32 %v949_v38, %v2451_v33 }
 0x1cd   : > { %v718_v53 = vsel %vm416_vm6, %v708_v44, %v716_v30  ;;  %v412_v30 = vld [vmem:[#allocation7] ss:$8 sm:$0x3] }
 0x1ce   : > { %v719_v34 = vsel %vm565_vm7, %v718_v53, %v717_v6  ;;  %v419_v53 = vmul.f32 %v2415_v51, %v412_v30 }
 0x1cf   : > { %720 = vrot.lane.b32.xlu2 %v719_v34, %s1479_s17  ;;  %v712_v34 = vld [vmem:[#allocation7 + $0x2] ss:$8 sm:$0x3] }
 0x1d1   : > { %v948_v61 = vpop.permute.xlu0 %947  ;;  %v855_v45 = vpop.permute.xlu1 %854 }
 0x1d2   : > { %v851_v10 = vpop.permute.xlu2 %850  ;;  %v863_v32 = vadd.f32 %v855_v45, %v833_v26  ;;  %v950_v18 = vsel %vm347_vm3, %v2442_v31, %v948_v61  ;;  %v956_v11 = vadd.f32 %v948_v61, %v2431_v62  ;;  %v865_v61 = vld [vmem:[#allocation7 + $0x3] ss:$8 sm:$0x3] }
 0x1d3   : > { %v955_v8 = vadd.f32 %v950_v18, %v2435_v63 }
 0x1d4   : > { %v870_v59 = vrot.slane %v863_v32, 6 }
 0x1d9   : > { %v853_v1 = vpop.permute.xlu0 %852  ;;  %v978_v21 = vpop.permute.xlu1 %977 }
 0x1da   : > { %v856_v40 = vsel %vm405_vm5, %v851_v10, %v853_v1  ;;  %v857_v49 = vsel %vm405_vm5, %v853_v1, %v855_v45  ;;  %v986_v50 = vadd.f32 %v978_v21, %v956_v11  ;;  %v1008_v23 = vpop.permute.xlu2 %1007 }
 0x1db   : > { %v862_v19 = vadd.f32 %v857_v49, %v832_v57  ;;  %v861_v46 = vadd.f32 %v856_v40, %v831_v55 }
 0x1dc   : > { %v1016_v4 = vadd.f32 %v1008_v23, %v986_v50 }
 0x1dd   : > { %v869_v58 = vrot.slane %v862_v19, 7 }
 0x1de   : > { %v1023_v15 = vrot.slane %v1016_v4, 6 }
 0x1df   : > { %v871_v25 = vsel %vm416_vm6, %v861_v46, %v869_v58 }
 0x1e0   : > { %v872_v24 = vsel %vm565_vm7, %v871_v25, %v870_v59 }
 0x1e1   : > { %v976_v48 = vpop.permute.xlu0 %975  ;;  %873 = vrot.lane.b32.xlu0 %v872_v24, %s1480_s20  ;;  %v1006_v56 = vpop.permute.xlu1 %1005 }
 0x1e2   : > { %v980_v36 = vsel %vm376_vm4, %v976_v48, %v978_v21  ;;  %v1010_v47 = vsel %vm405_vm5, %v1006_v56, %v1008_v23 }
 0x1e3   : > { %v985_v20 = vadd.f32 %v980_v36, %v955_v8  ;;  %v2615_v8 = vld [vmem:[#allocation22_spill] sm:$0xff] }
 0x1e5   : > { %v1015_v60 = vadd.f32 %v1010_v47, %v985_v20 }
 0x1e7   : > { %v1022_v62 = vrot.slane %v1015_v60, 7 }
 0x1e9   : > { %v974_v17 = vpop.permute.xlu0 %973 }
 0x1ea   : > { %v979_v14 = vsel %vm376_vm4, %v974_v17, %v976_v48 }
 0x1eb   : > { %v984_v9 = vadd.f32 %v979_v14, %v954_v52 }
 0x1f1   : > { %v1004_v63 = vpop.permute.xlu0 %1003 }
 0x1f2   : > { %v1009_v27 = vsel %vm405_vm5, %v1004_v63, %v1006_v56 }
 0x1f3   : > { %v1014_v43 = vadd.f32 %v1009_v27, %v984_v9 }
 0x1f5   : > { %v1024_v16 = vsel %vm416_vm6, %v1014_v43, %v1022_v62 }
 0x1f6   : > { %v1025_v31 = vsel %vm565_vm7, %v1024_v16, %v1023_v15 }
 0x1f7   : > { %1026 = vrot.lane.b32.xlu1 %v1025_v31, %s1481_s18 }
 0x229   : > { %v721_v29 = vpop.permute.xlu2 %720 }
 0x22a   : > { %v722_v35 = vrot.slane %v721_v29, 1 }
 0x22c   : > { %v724_v42 = vsel %vm723_vm9, %v721_v29, %v722_v35 }
 0x22d   : > { %v726_v13 = vmul.f32 %v724_v42, %v712_v34 }
 0x231   : > { %v568_v28 = vpop.permute.xlu1 %567 }
 0x232   : > { %v569_v7 = vrot.slane %v568_v28, 1 }
 0x234   : > { %v571_v2 = vsel %vm570_vm8, %v568_v28, %v569_v7 }
 0x235   : > { %v573_v6 = vmul.f32 %v571_v2, %v558_v12 }
 0x237   : > { %v574_v22 = vadd.f32 %v573_v6, %v419_v53 }
 0x239   : > { %v727_v45 = vadd.f32 %v726_v13, %v574_v22 }
 0x253   : > { %v874_v33 = vpop.permute.xlu0 %873 }
 0x254   : > { %v875_v44 = vrot.slane %v874_v33, 1 }
 0x256   : > { %v877_v3 = vsel %vm876_vm10, %v874_v33, %v875_v44 }
 0x257   : > { %v879_v0 = vmul.f32 %v877_v3, %v865_v61 }
 0x259   : > { %v880_v26 = vadd.f32 %v879_v0, %v727_v45 }
 0x269   : > { %v1027_v37 = vpop.permute.xlu1 %1026 }
 0x26a   : > { %v1028_v39 = vrot.slane %v1027_v37, 1 }
 0x26c   : > { %v1030_v5 = vsel %vm1029_vm11, %v1027_v37, %v1028_v39 }
 0x26d   : > { %v1032_v54 = vmul.f32 %v1030_v5, %v1018_v41 }
 0x26f   : > { %v1033_v57 = vadd.f32 %v1032_v54, %v880_v26 }
 0x271   : > { %v1232_v10 = vmul.f32 -1.442695, %v1033_v57 }
 0x273   : > { %1316 = vpow2.f32 %v1232_v10 }
 0x279   : > { %v1317_v51 = vpop.eup %1316 }
 0x27a   : > { %v1037_v1 = vadd.f32 1.0, %v1317_v51 }
 0x27c   : > { %1318 = vrcp.f32 %v1037_v1  ;;  %v1049_v55 = vand.u32 2147483648, %v1037_v1  ;;  %v1047_v46 = vand.u32 2147483647, %v1037_v1  ;;  %vm1043_vm13 = vweird.f32 %v1037_v1 }
 0x27e   : > { %v1050_v59 = vor.u32 1.1754944e-38, %v1049_v55  ;;  %vm1048_vm15 = vcmp.eq.f32.partialorder %v1047_v46, 8.507059e+37 }
 0x282   : > { %v1319_v32 = vpop.eup %1318 }
 0x283   : > { %v1039_v40 = vmul.f32 %v1319_v32, %v1037_v1  ;;  %vm1044_vm12 = vweird.f32 %v1319_v32 }
 0x284   : > { %vm1045_vm14 = vmor %vm1043_vm13, %vm1044_vm12 }
 0x285   : > { %v1040_v49 = vsub.f32 1.0, %v1039_v40 }
 0x287   : > { %v1041_v19 = vmul.f32 %v1319_v32, %v1040_v49 }
 0x289   : > { %v1042_v58 = vadd.f32 %v1319_v32, %v1041_v19 }
 0x28b   : > { %v1046_v25 = vsel %vm1045_vm14, %v1319_v32, %v1042_v58 }
 0x28c   : > { %v1051_v24 = vsel %vm1048_vm15, %v1050_v59, %v1046_v25 }
 0x28d   : > { %v1055_v21 = vperm.slane %v1051_v24, 1  ;;  %v1054_v48 = vperm.slane %v1051_v24, 0 }
 0x28f   : > { %v1056_v18 = vrot.slane %v1055_v21, 4 }
 0x291   : > { %v1057_v36 = vsel %vm225_vm0, %v1054_v48, %v1056_v18 }
 0x292   : > { %v1059_v17 = vmul.f32 %v1057_v36, %v2615_v8 }
 0x294   : > { %1060 = vst [vmem:[%s217_s13] sm:$0xff] %v1059_v17 }
 0x295   : > { %1422 = shalt.err (!%p1419_p11)
}
 0x296   : > { %1250 = dma.vmem_to_hbm [thread:$0]  (%p1568_p3), %s1076_s14, 128, %s1078_s15, %s1062_s16  }
 0x297 PF: > { %s2616_s8 = sld [smem:[#allocation14_spill]] }
 0x298   : > { %s2618_s27 = sld [smem:[#allocation17_spill]] }
 0x29d   : > { %s1089_s28 = sand.u32 1, %s2616_s8  }
 0x29e   : > { %p2619_p12 = scmp.ge.s32.totalorder %s2618_s27, 2  ;;  %s1090_s29 = scalar_lea.sflag [#allocation4], %s1089_s28 }
 0x2a0   : > { %p1264_p13 = pnand %p2619_p12, %p1537_p6 }
 0x2a2   : > { %p1265_p0 = pneg %p1264_p13 }
 0x2a4   : > { %1452 = dma.done.wait (%p1265_p0), %s1090_s29, 128  }
 0x2a5   : > { %1454 = vsyncadd (%p1265_p0), %s1090_s29, 4294967168  ;;  %s2620_s15 = sld [smem:[#allocation19_spill]] }
 0x2a6   : > { %s2621_s12 = sld [smem:[#allocation15_spill]] }
 0x2a7   : > { %s2622_s13 = sld [smem:[#allocation16_spill]] }
 0x2a8   : > { %s2623_s14 = sld [smem:[#allocation21_spill]] }
 0x2ab   : > { %p18_p5 = scmp.ge.s32.totalorder %s2620_s15, 4  }
 0x2ad   :  { %20 = sbr.rel (!%p18_p5) target bundleno = 12 (0xc), region = 90 }
 0x2b2   :  { %1096 = vsyncpa [#allocation3], 1 }
 0x2b3   :  { %1098 = vsyncpa [#allocation3 + $0x1], 1 }
 0x2b4   :  { %1099 = vsyncpa [#allocation8], 1 }
 0x2b5   :  { %1100 = vsyncpa [#allocation4], 1 }
 0x2b6   :  { %1102 = vsyncpa [#allocation4 + $0x1], 1 }
 0x2b7   :  { %1103 = vsyncpa [#allocation5], 1 }
 0x2b8   :  { %1105 = vsyncpa [#allocation5 + $0x1], 1 }

</bundles_post_ra>
